<compile_context>
chip_gen: v6e
topology: v6e:2x2x1
jax: 0.10.0
libtpu: 0.0.40
codegen_flags: <defaults>
</compile_context>

<pallas_src>
import functools

import jax
import jax.numpy as jnp
from jax.experimental import pallas as pl
from jax.experimental.pallas import tpu as pltpu


# ---------------------------------------------------------------------------
# Kernel
# ---------------------------------------------------------------------------
def _out_block_kernel(x0_ref, x1_ref, x2_ref, w1_ref, shift_ref, w2_ref,
                      b2_ref, o_ref, *, wp):
    """One (batch, output-depth) step of conv3x3x3 -> BN -> ReLU -> conv1x1x1.

    x0/x1/x2_ref : (1, 1, Cin, Psrc) bf16  padded planes at depth d-1, d, d+1
                                           (flattened (H+3, W+2) rows)
    w1_ref       : (27, Cmid, Cin)   bf16  conv1 weights, BN scale folded,
                                           tap-major t = kd*9 + kh*3 + kw
    shift_ref    : (Cmid, 1)         f32   folded BN shift (incl. conv1 bias)
    w2_ref       : (Cout, Cmid)      f32   1x1x1 conv weights   (SMEM)
    b2_ref       : (Cout,)           f32   conv2 bias            (SMEM)
    o_ref        : (1, 1, Cout, Lout) f32  output plane, Lout = H*(W+2)
    """
    cmid = w1_ref.shape[1]
    cout = o_ref.shape[2]
    lout = o_ref.shape[3]

    x_slabs = (x0_ref[0, 0], x1_ref[0, 0], x2_ref[0, 0])   # (Cin, Psrc) bf16

    # 3x3x3 conv: build the 27 taps in VMEM (static lane-offset slices of the
    # flattened padded plane) and accumulate 27 small bf16 MXU dots in f32.
    # TODO(synk): the lane-offset slices could become pltpu.roll (XLU) taps.
    acc = None
    for kd in range(3):
        xs = x_slabs[kd]
        for kh in range(3):
            for kw in range(3):
                delta = kh * wp + kw
                tap = xs[:, delta:delta + lout]             # (Cin, Lout) bf16
                t = kd * 9 + kh * 3 + kw
                contrib = jnp.dot(w1_ref[t], tap,
                                  preferred_element_type=jnp.float32)
                acc = contrib if acc is None else acc + contrib

    # Folded BatchNorm shift + ReLU (f32 epilogue on the accumulator).
    h = jnp.maximum(acc + shift_ref[...], 0.0)              # (Cmid, Lout) f32

    # 1x1x1 conv on the VPU: Cout*Cmid broadcast FMAs with SMEM scalars
    # (an M=2, K=4 MXU dot would waste a second MXU push for <2% utilization).
    rows = []
    for c in range(cout):
        r = h[0:1, :] * w2_ref[c, 0]
        for k in range(1, cmid):
            r = r + h[k:k + 1, :] * w2_ref[c, k]
        rows.append(r + b2_ref[c])
    o_ref[0, 0] = jnp.concatenate(rows, axis=0)             # (Cout, Lout) f32


# ---------------------------------------------------------------------------
# Parameter folding (inference BN) and layout prep
# ---------------------------------------------------------------------------
def _prepare_params(w1, b1, gamma, beta, run_mean, run_var, w2, b2, eps):
    """Fold BN (inference) + conv1 bias into conv1 weights / a per-channel shift."""
    cmid, cin = w1.shape[0], w1.shape[1]
    cout = w2.shape[0]
    scale = gamma / jnp.sqrt(run_var + eps)                         # (Cmid,)
    # torch (Cmid, Cin, kd, kh, kw) -> (27, Cmid, Cin), tap-major.
    w1_t = jnp.transpose(w1, (2, 3, 4, 0, 1)).reshape(27, cmid, cin)
    w1_folded = (w1_t * scale[None, :, None]).astype(jnp.bfloat16)
    shift = (scale * (b1 - run_mean) + beta).reshape(cmid, 1).astype(jnp.float32)
    w2_mat = w2.reshape(cout, cmid).astype(jnp.float32)
    b2_vec = b2.reshape(cout).astype(jnp.float32)
    return w1_folded, shift, w2_mat, b2_vec


# ---------------------------------------------------------------------------
# Public entry point
# ---------------------------------------------------------------------------
def out_block(x_ncdhw, w1, b1, gamma, beta, run_mean, run_var, w2, b2,
              eps=1e-5):
    """x_ncdhw: (N, Cin, D, H, W) float32.  Returns (N, Cout, D, H, W) f32."""
    N, Cin, D, H, W = x_ncdhw.shape
    Cmid = w1.shape[0]
    Cout = w2.shape[0]

    Wp = W + 2                      # padded row length (W halo)
    Hrows = H + 3                   # 1 top halo row + 2 bottom rows (halo+slack)
    Psrc = Hrows * Wp               # flattened padded plane length
    Lout = H * Wp                   # computed output length per plane

    # bf16 BEFORE padding (halves wrapper HBM traffic), depth-major layout.
    xb = x_ncdhw.astype(jnp.bfloat16)
    xt = jnp.transpose(xb, (0, 2, 1, 3, 4))                 # (N, D, Cin, H, W)
    xp = jnp.pad(xt, ((0, 0), (1, 1), (0, 0), (1, 2), (1, 1)))
    x_flat = xp.reshape(N, D + 2, Cin, Psrc)                # (N, D+2, Cin, Psrc)

    w1f, shift, w2_mat, b2_vec = _prepare_params(
        w1, b1, gamma, beta, run_mean, run_var, w2, b2, eps)

    flops = (2 * 27 * Cin * Cmid + 2 * Cmid * Cout) * N * D * H * W
    bytes_accessed = (3 * N * D * Cin * Psrc * 2            # 3 input planes/step
                      + N * D * Cout * Lout * 4             # output planes
                      + 27 * Cmid * Cin * 2 + Cmid * 4
                      + Cout * Cmid * 4 + Cout * 4)
    cost = pl.CostEstimate(flops=int(flops), transcendentals=0,
                           bytes_accessed=int(bytes_accessed))

    kernel = functools.partial(_out_block_kernel, wp=Wp)

    out_flat = pl.pallas_call(
        kernel,
        out_shape=jax.ShapeDtypeStruct((N, D, Cout, Lout), jnp.float32),
        grid_spec=pltpu.PrefetchScalarGridSpec(
            num_scalar_prefetch=0,
            grid=(N, D),
            in_specs=[
                # Depth halo via three views of the same padded array
                # (depth block = 1, so block index == padded depth index).
                pl.BlockSpec((1, 1, Cin, Psrc), lambda n, d: (n, d, 0, 0)),
                pl.BlockSpec((1, 1, Cin, Psrc), lambda n, d: (n, d + 1, 0, 0)),
                pl.BlockSpec((1, 1, Cin, Psrc), lambda n, d: (n, d + 2, 0, 0)),
                pl.BlockSpec((27, Cmid, Cin), lambda n, d: (0, 0, 0)),
                pl.BlockSpec((Cmid, 1), lambda n, d: (0, 0)),
                pl.BlockSpec(memory_space=pltpu.MemorySpace.SMEM),   # w2
                pl.BlockSpec(memory_space=pltpu.MemorySpace.SMEM),   # b2
            ],
            out_specs=pl.BlockSpec((1, 1, Cout, Lout),
                                   lambda n, d: (n, d, 0, 0)),
        ),
        compiler_params=pltpu.CompilerParams(
            dimension_semantics=("parallel", "parallel"),
            vmem_limit_bytes=32 * 1024 * 1024),
        cost_estimate=cost,
    )(x_flat, x_flat, x_flat, w1f, shift, w2_mat, b2_vec)

    # Strip the W halo (valid outputs sit at p = h*Wp + w, w < W) and go back
    # to NCDHW.  Pure reshape + tiny slice/transpose on the small Cout output.
    out = out_flat.reshape(N, D, Cout, H, Wp)[..., :W]       # (N, D, Cout, H, W)
    return jnp.transpose(out, (0, 2, 1, 3, 4))               # (N, Cout, D, H, W)


# ---------------------------------------------------------------------------
# Pure-JAX reference (same folded params / same bf16 casts, no Pallas)
# ---------------------------------------------------------------------------
def out_block_ref(x_ncdhw, w1, b1, gamma, beta, run_mean, run_var, w2, b2,
                  eps=1e-5):
    N, Cin, D, H, W = x_ncdhw.shape
    Cmid = w1.shape[0]
    Cout = w2.shape[0]
    w1f, shift, w2_mat, b2_vec = _prepare_params(
        w1, b1, gamma, beta, run_mean, run_var, w2, b2, eps)
    w1f32 = w1f.astype(jnp.float32)
    xb = x_ncdhw.astype(jnp.bfloat16).astype(jnp.float32)
    xp = jnp.pad(xb, ((0, 0), (0, 0), (1, 1), (1, 1), (1, 1)))
    h = jnp.zeros((N, Cmid, D, H, W), jnp.float32)
    t = 0
    for kd in range(3):
        for kh in range(3):
            for kw in range(3):
                tap = xp[:, :, kd:kd + D, kh:kh + H, kw:kw + W]
                h = h + jnp.einsum('mc,ncdhw->nmdhw', w1f32[t], tap)
                t += 1
    h = jnp.maximum(h + shift.reshape(1, Cmid, 1, 1, 1), 0.0)
    out = (jnp.einsum('oc,ncdhw->nodhw', w2_mat, h)
           + b2_vec.reshape(1, Cout, 1, 1, 1))
    return out


if __name__ == "__main__":
    N, Cin, Cout, D, H, W = 2, 4, 2, 8, 8, 8

    key = jax.random.PRNGKey(0)
    ks = jax.random.split(key, 5)
    x = jax.random.normal(ks[0], (N, Cin, D, H, W), jnp.float32)

    # Deterministic synthetic parameters (torch-like shapes).
    w1 = 0.1 * jax.random.normal(ks[1], (Cin, Cin, 3, 3, 3), jnp.float32)
    b1 = 0.01 * jax.random.normal(ks[2], (Cin,), jnp.float32)
    gamma = 1.0 + 0.1 * jnp.arange(Cin, dtype=jnp.float32)
    beta = 0.05 * jnp.arange(Cin, dtype=jnp.float32)
    run_mean = 0.02 * jnp.arange(Cin, dtype=jnp.float32)
    run_var = 1.0 + 0.01 * jnp.arange(Cin, dtype=jnp.float32)
    w2 = 0.1 * jax.random.normal(ks[3], (Cout, Cin, 1, 1, 1), jnp.float32)
    b2 = 0.01 * jax.random.normal(ks[4], (Cout,), jnp.float32)

    out = out_block(x, w1, b1, gamma, beta, run_mean, run_var, w2, b2)
    out = jax.block_until_ready(out)

    ref = out_block_ref(x, w1, b1, gamma, beta, run_mean, run_var, w2, b2)
    assert out.shape == (N, Cout, D, H, W)
    max_err = float(jnp.max(jnp.abs(out - ref)))
    assert jnp.allclose(out, ref, atol=1e-2, rtol=1e-2), max_err

    print("KERNEL_OK")
</pallas_src>

<mosaic_0001>
module attributes {stable_mosaic.version = 11 : i64} {
  func.func @_out_block_kernel(%arg0: i32, %arg1: i32, %arg2: memref<1x1x4x110xbf16, #tpu.memory_space<vmem>>, %arg3: memref<1x1x4x110xbf16, #tpu.memory_space<vmem>>, %arg4: memref<1x1x4x110xbf16, #tpu.memory_space<vmem>>, %arg5: memref<27x4x4xbf16, #tpu.memory_space<vmem>>, %arg6: memref<4x1xf32, #tpu.memory_space<vmem>>, %arg7: memref<2x4xf32, #tpu.memory_space<smem>>, %arg8: memref<2xf32, #tpu.memory_space<smem>>, %arg9: memref<1x1x2x80xf32, #tpu.memory_space<vmem>>) attributes {dimension_semantics = [#tpu.dimension_semantics<parallel>, #tpu.dimension_semantics<parallel>], iteration_bounds = array<i64: 2, 8>, scalar_prefetch = 0 : i64, scratch_operands = 0 : i64, tpu.core_type = #tpu.core_type<tc>, window_params = [{transform_indices = @transform_0, window_bounds = array<i64: 1, 1, 4, 110>}, {transform_indices = @transform_1, window_bounds = array<i64: 1, 1, 4, 110>}, {transform_indices = @transform_2, window_bounds = array<i64: 1, 1, 4, 110>}, {pipeline_mode = #tpu.pipeline_mode<synchronous>, transform_indices = @transform_3, window_bounds = array<i64: 27, 4, 4>}, {pipeline_mode = #tpu.pipeline_mode<synchronous>, transform_indices = @transform_4, window_bounds = array<i64: 4, 1>}, {transform_indices = @transform_5, window_bounds = array<i64: 2, 4>}, {transform_indices = @transform_6, window_bounds = array<i64: 2>}, {transform_indices = @transform_7, window_bounds = array<i64: 1, 1, 2, 80>}]} {
    %c0 = arith.constant 0 : index
    %c0_0 = arith.constant 0 : index
    %c0_1 = arith.constant 0 : index
    %c0_2 = arith.constant 0 : index
    %0 = vector.load %arg2[%c0, %c0_0, %c0_1, %c0_2] : memref<1x1x4x110xbf16, #tpu.memory_space<vmem>>, vector<1x1x4x110xbf16>
    %1 = vector.shape_cast %0 : vector<1x1x4x110xbf16> to vector<4x110xbf16>
    %c0_3 = arith.constant 0 : index
    %c0_4 = arith.constant 0 : index
    %c0_5 = arith.constant 0 : index
    %c0_6 = arith.constant 0 : index
    %2 = vector.load %arg3[%c0_3, %c0_4, %c0_5, %c0_6] : memref<1x1x4x110xbf16, #tpu.memory_space<vmem>>, vector<1x1x4x110xbf16>
    %3 = vector.shape_cast %2 : vector<1x1x4x110xbf16> to vector<4x110xbf16>
    %c0_7 = arith.constant 0 : index
    %c0_8 = arith.constant 0 : index
    %c0_9 = arith.constant 0 : index
    %c0_10 = arith.constant 0 : index
    %4 = vector.load %arg4[%c0_7, %c0_8, %c0_9, %c0_10] : memref<1x1x4x110xbf16, #tpu.memory_space<vmem>>, vector<1x1x4x110xbf16>
    %5 = vector.shape_cast %4 : vector<1x1x4x110xbf16> to vector<4x110xbf16>
    %6 = vector.extract_strided_slice %1 {offsets = [0, 0], sizes = [4, 80], strides = [1, 1]} : vector<4x110xbf16> to vector<4x80xbf16>
    %c0_11 = arith.constant 0 : index
    %c0_12 = arith.constant 0 : index
    %c0_13 = arith.constant 0 : index
    %7 = vector.load %arg5[%c0_11, %c0_12, %c0_13] : memref<27x4x4xbf16, #tpu.memory_space<vmem>>, vector<1x4x4xbf16>
    %8 = vector.shape_cast %7 : vector<1x4x4xbf16> to vector<4x4xbf16>
    %cst = arith.constant dense<0.000000e+00> : vector<4x80xf32>
    %9 = tpu.matmul %8, %6, %cst {dimension_numbers = #tpu.dot_dimension_numbers<[1], [0], [0], [1], [0, 0, 1, 1], [], []>} : vector<4x4xbf16>, vector<4x80xbf16>, vector<4x80xf32> -> vector<4x80xf32>
    %10 = vector.extract_strided_slice %1 {offsets = [0, 1], sizes = [4, 80], strides = [1, 1]} : vector<4x110xbf16> to vector<4x80xbf16>
    %c1 = arith.constant 1 : index
    %c0_14 = arith.constant 0 : index
    %c0_15 = arith.constant 0 : index
    %11 = vector.load %arg5[%c1, %c0_14, %c0_15] : memref<27x4x4xbf16, #tpu.memory_space<vmem>>, vector<1x4x4xbf16>
    %12 = vector.shape_cast %11 : vector<1x4x4xbf16> to vector<4x4xbf16>
    %cst_16 = arith.constant dense<0.000000e+00> : vector<4x80xf32>
    %13 = tpu.matmul %12, %10, %cst_16 {dimension_numbers = #tpu.dot_dimension_numbers<[1], [0], [0], [1], [0, 0, 1, 1], [], []>} : vector<4x4xbf16>, vector<4x80xbf16>, vector<4x80xf32> -> vector<4x80xf32>
    %14 = arith.addf %9, %13 : vector<4x80xf32>
    %15 = vector.extract_strided_slice %1 {offsets = [0, 2], sizes = [4, 80], strides = [1, 1]} : vector<4x110xbf16> to vector<4x80xbf16>
    %c2 = arith.constant 2 : index
    %c0_17 = arith.constant 0 : index
    %c0_18 = arith.constant 0 : index
    %16 = vector.load %arg5[%c2, %c0_17, %c0_18] : memref<27x4x4xbf16, #tpu.memory_space<vmem>>, vector<1x4x4xbf16>
    %17 = vector.shape_cast %16 : vector<1x4x4xbf16> to vector<4x4xbf16>
    %cst_19 = arith.constant dense<0.000000e+00> : vector<4x80xf32>
    %18 = tpu.matmul %17, %15, %cst_19 {dimension_numbers = #tpu.dot_dimension_numbers<[1], [0], [0], [1], [0, 0, 1, 1], [], []>} : vector<4x4xbf16>, vector<4x80xbf16>, vector<4x80xf32> -> vector<4x80xf32>
    %19 = arith.addf %14, %18 : vector<4x80xf32>
    %20 = vector.extract_strided_slice %1 {offsets = [0, 10], sizes = [4, 80], strides = [1, 1]} : vector<4x110xbf16> to vector<4x80xbf16>
    %c3 = arith.constant 3 : index
    %c0_20 = arith.constant 0 : index
    %c0_21 = arith.constant 0 : index
    %21 = vector.load %arg5[%c3, %c0_20, %c0_21] : memref<27x4x4xbf16, #tpu.memory_space<vmem>>, vector<1x4x4xbf16>
    %22 = vector.shape_cast %21 : vector<1x4x4xbf16> to vector<4x4xbf16>
    %cst_22 = arith.constant dense<0.000000e+00> : vector<4x80xf32>
    %23 = tpu.matmul %22, %20, %cst_22 {dimension_numbers = #tpu.dot_dimension_numbers<[1], [0], [0], [1], [0, 0, 1, 1], [], []>} : vector<4x4xbf16>, vector<4x80xbf16>, vector<4x80xf32> -> vector<4x80xf32>
    %24 = arith.addf %19, %23 : vector<4x80xf32>
    %25 = vector.extract_strided_slice %1 {offsets = [0, 11], sizes = [4, 80], strides = [1, 1]} : vector<4x110xbf16> to vector<4x80xbf16>
    %c4 = arith.constant 4 : index
    %c0_23 = arith.constant 0 : index
    %c0_24 = arith.constant 0 : index
    %26 = vector.load %arg5[%c4, %c0_23, %c0_24] : memref<27x4x4xbf16, #tpu.memory_space<vmem>>, vector<1x4x4xbf16>
    %27 = vector.shape_cast %26 : vector<1x4x4xbf16> to vector<4x4xbf16>
    %cst_25 = arith.constant dense<0.000000e+00> : vector<4x80xf32>
    %28 = tpu.matmul %27, %25, %cst_25 {dimension_numbers = #tpu.dot_dimension_numbers<[1], [0], [0], [1], [0, 0, 1, 1], [], []>} : vector<4x4xbf16>, vector<4x80xbf16>, vector<4x80xf32> -> vector<4x80xf32>
    %29 = arith.addf %24, %28 : vector<4x80xf32>
    %30 = vector.extract_strided_slice %1 {offsets = [0, 12], sizes = [4, 80], strides = [1, 1]} : vector<4x110xbf16> to vector<4x80xbf16>
    %c5 = arith.constant 5 : index
    %c0_26 = arith.constant 0 : index
    %c0_27 = arith.constant 0 : index
    %31 = vector.load %arg5[%c5, %c0_26, %c0_27] : memref<27x4x4xbf16, #tpu.memory_space<vmem>>, vector<1x4x4xbf16>
    %32 = vector.shape_cast %31 : vector<1x4x4xbf16> to vector<4x4xbf16>
    %cst_28 = arith.constant dense<0.000000e+00> : vector<4x80xf32>
    %33 = tpu.matmul %32, %30, %cst_28 {dimension_numbers = #tpu.dot_dimension_numbers<[1], [0], [0], [1], [0, 0, 1, 1], [], []>} : vector<4x4xbf16>, vector<4x80xbf16>, vector<4x80xf32> -> vector<4x80xf32>
    %34 = arith.addf %29, %33 : vector<4x80xf32>
    %35 = vector.extract_strided_slice %1 {offsets = [0, 20], sizes = [4, 80], strides = [1, 1]} : vector<4x110xbf16> to vector<4x80xbf16>
    %c6 = arith.constant 6 : index
    %c0_29 = arith.constant 0 : index
    %c0_30 = arith.constant 0 : index
    %36 = vector.load %arg5[%c6, %c0_29, %c0_30] : memref<27x4x4xbf16, #tpu.memory_space<vmem>>, vector<1x4x4xbf16>
    %37 = vector.shape_cast %36 : vector<1x4x4xbf16> to vector<4x4xbf16>
    %cst_31 = arith.constant dense<0.000000e+00> : vector<4x80xf32>
    %38 = tpu.matmul %37, %35, %cst_31 {dimension_numbers = #tpu.dot_dimension_numbers<[1], [0], [0], [1], [0, 0, 1, 1], [], []>} : vector<4x4xbf16>, vector<4x80xbf16>, vector<4x80xf32> -> vector<4x80xf32>
    %39 = arith.addf %34, %38 : vector<4x80xf32>
    %40 = vector.extract_strided_slice %1 {offsets = [0, 21], sizes = [4, 80], strides = [1, 1]} : vector<4x110xbf16> to vector<4x80xbf16>
    %c7 = arith.constant 7 : index
    %c0_32 = arith.constant 0 : index
    %c0_33 = arith.constant 0 : index
    %41 = vector.load %arg5[%c7, %c0_32, %c0_33] : memref<27x4x4xbf16, #tpu.memory_space<vmem>>, vector<1x4x4xbf16>
    %42 = vector.shape_cast %41 : vector<1x4x4xbf16> to vector<4x4xbf16>
    %cst_34 = arith.constant dense<0.000000e+00> : vector<4x80xf32>
    %43 = tpu.matmul %42, %40, %cst_34 {dimension_numbers = #tpu.dot_dimension_numbers<[1], [0], [0], [1], [0, 0, 1, 1], [], []>} : vector<4x4xbf16>, vector<4x80xbf16>, vector<4x80xf32> -> vector<4x80xf32>
    %44 = arith.addf %39, %43 : vector<4x80xf32>
    %45 = vector.extract_strided_slice %1 {offsets = [0, 22], sizes = [4, 80], strides = [1, 1]} : vector<4x110xbf16> to vector<4x80xbf16>
    %c8 = arith.constant 8 : index
    %c0_35 = arith.constant 0 : index
    %c0_36 = arith.constant 0 : index
    %46 = vector.load %arg5[%c8, %c0_35, %c0_36] : memref<27x4x4xbf16, #tpu.memory_space<vmem>>, vector<1x4x4xbf16>
    %47 = vector.shape_cast %46 : vector<1x4x4xbf16> to vector<4x4xbf16>
    %cst_37 = arith.constant dense<0.000000e+00> : vector<4x80xf32>
    %48 = tpu.matmul %47, %45, %cst_37 {dimension_numbers = #tpu.dot_dimension_numbers<[1], [0], [0], [1], [0, 0, 1, 1], [], []>} : vector<4x4xbf16>, vector<4x80xbf16>, vector<4x80xf32> -> vector<4x80xf32>
    %49 = arith.addf %44, %48 : vector<4x80xf32>
    %50 = vector.extract_strided_slice %3 {offsets = [0, 0], sizes = [4, 80], strides = [1, 1]} : vector<4x110xbf16> to vector<4x80xbf16>
    %c9 = arith.constant 9 : index
    %c0_38 = arith.constant 0 : index
    %c0_39 = arith.constant 0 : index
    %51 = vector.load %arg5[%c9, %c0_38, %c0_39] : memref<27x4x4xbf16, #tpu.memory_space<vmem>>, vector<1x4x4xbf16>
    %52 = vector.shape_cast %51 : vector<1x4x4xbf16> to vector<4x4xbf16>
    %cst_40 = arith.constant dense<0.000000e+00> : vector<4x80xf32>
    %53 = tpu.matmul %52, %50, %cst_40 {dimension_numbers = #tpu.dot_dimension_numbers<[1], [0], [0], [1], [0, 0, 1, 1], [], []>} : vector<4x4xbf16>, vector<4x80xbf16>, vector<4x80xf32> -> vector<4x80xf32>
    %54 = arith.addf %49, %53 : vector<4x80xf32>
    %55 = vector.extract_strided_slice %3 {offsets = [0, 1], sizes = [4, 80], strides = [1, 1]} : vector<4x110xbf16> to vector<4x80xbf16>
    %c10 = arith.constant 10 : index
    %c0_41 = arith.constant 0 : index
    %c0_42 = arith.constant 0 : index
    %56 = vector.load %arg5[%c10, %c0_41, %c0_42] : memref<27x4x4xbf16, #tpu.memory_space<vmem>>, vector<1x4x4xbf16>
    %57 = vector.shape_cast %56 : vector<1x4x4xbf16> to vector<4x4xbf16>
    %cst_43 = arith.constant dense<0.000000e+00> : vector<4x80xf32>
    %58 = tpu.matmul %57, %55, %cst_43 {dimension_numbers = #tpu.dot_dimension_numbers<[1], [0], [0], [1], [0, 0, 1, 1], [], []>} : vector<4x4xbf16>, vector<4x80xbf16>, vector<4x80xf32> -> vector<4x80xf32>
    %59 = arith.addf %54, %58 : vector<4x80xf32>
    %60 = vector.extract_strided_slice %3 {offsets = [0, 2], sizes = [4, 80], strides = [1, 1]} : vector<4x110xbf16> to vector<4x80xbf16>
    %c11 = arith.constant 11 : index
    %c0_44 = arith.constant 0 : index
    %c0_45 = arith.constant 0 : index
    %61 = vector.load %arg5[%c11, %c0_44, %c0_45] : memref<27x4x4xbf16, #tpu.memory_space<vmem>>, vector<1x4x4xbf16>
    %62 = vector.shape_cast %61 : vector<1x4x4xbf16> to vector<4x4xbf16>
    %cst_46 = arith.constant dense<0.000000e+00> : vector<4x80xf32>
    %63 = tpu.matmul %62, %60, %cst_46 {dimension_numbers = #tpu.dot_dimension_numbers<[1], [0], [0], [1], [0, 0, 1, 1], [], []>} : vector<4x4xbf16>, vector<4x80xbf16>, vector<4x80xf32> -> vector<4x80xf32>
    %64 = arith.addf %59, %63 : vector<4x80xf32>
    %65 = vector.extract_strided_slice %3 {offsets = [0, 10], sizes = [4, 80], strides = [1, 1]} : vector<4x110xbf16> to vector<4x80xbf16>
    %c12 = arith.constant 12 : index
    %c0_47 = arith.constant 0 : index
    %c0_48 = arith.constant 0 : index
    %66 = vector.load %arg5[%c12, %c0_47, %c0_48] : memref<27x4x4xbf16, #tpu.memory_space<vmem>>, vector<1x4x4xbf16>
    %67 = vector.shape_cast %66 : vector<1x4x4xbf16> to vector<4x4xbf16>
    %cst_49 = arith.constant dense<0.000000e+00> : vector<4x80xf32>
    %68 = tpu.matmul %67, %65, %cst_49 {dimension_numbers = #tpu.dot_dimension_numbers<[1], [0], [0], [1], [0, 0, 1, 1], [], []>} : vector<4x4xbf16>, vector<4x80xbf16>, vector<4x80xf32> -> vector<4x80xf32>
    %69 = arith.addf %64, %68 : vector<4x80xf32>
    %70 = vector.extract_strided_slice %3 {offsets = [0, 11], sizes = [4, 80], strides = [1, 1]} : vector<4x110xbf16> to vector<4x80xbf16>
    %c13 = arith.constant 13 : index
    %c0_50 = arith.constant 0 : index
    %c0_51 = arith.constant 0 : index
    %71 = vector.load %arg5[%c13, %c0_50, %c0_51] : memref<27x4x4xbf16, #tpu.memory_space<vmem>>, vector<1x4x4xbf16>
    %72 = vector.shape_cast %71 : vector<1x4x4xbf16> to vector<4x4xbf16>
    %cst_52 = arith.constant dense<0.000000e+00> : vector<4x80xf32>
    %73 = tpu.matmul %72, %70, %cst_52 {dimension_numbers = #tpu.dot_dimension_numbers<[1], [0], [0], [1], [0, 0, 1, 1], [], []>} : vector<4x4xbf16>, vector<4x80xbf16>, vector<4x80xf32> -> vector<4x80xf32>
    %74 = arith.addf %69, %73 : vector<4x80xf32>
    %75 = vector.extract_strided_slice %3 {offsets = [0, 12], sizes = [4, 80], strides = [1, 1]} : vector<4x110xbf16> to vector<4x80xbf16>
    %c14 = arith.constant 14 : index
    %c0_53 = arith.constant 0 : index
    %c0_54 = arith.constant 0 : index
    %76 = vector.load %arg5[%c14, %c0_53, %c0_54] : memref<27x4x4xbf16, #tpu.memory_space<vmem>>, vector<1x4x4xbf16>
    %77 = vector.shape_cast %76 : vector<1x4x4xbf16> to vector<4x4xbf16>
    %cst_55 = arith.constant dense<0.000000e+00> : vector<4x80xf32>
    %78 = tpu.matmul %77, %75, %cst_55 {dimension_numbers = #tpu.dot_dimension_numbers<[1], [0], [0], [1], [0, 0, 1, 1], [], []>} : vector<4x4xbf16>, vector<4x80xbf16>, vector<4x80xf32> -> vector<4x80xf32>
    %79 = arith.addf %74, %78 : vector<4x80xf32>
    %80 = vector.extract_strided_slice %3 {offsets = [0, 20], sizes = [4, 80], strides = [1, 1]} : vector<4x110xbf16> to vector<4x80xbf16>
    %c15 = arith.constant 15 : index
    %c0_56 = arith.constant 0 : index
    %c0_57 = arith.constant 0 : index
    %81 = vector.load %arg5[%c15, %c0_56, %c0_57] : memref<27x4x4xbf16, #tpu.memory_space<vmem>>, vector<1x4x4xbf16>
    %82 = vector.shape_cast %81 : vector<1x4x4xbf16> to vector<4x4xbf16>
    %cst_58 = arith.constant dense<0.000000e+00> : vector<4x80xf32>
    %83 = tpu.matmul %82, %80, %cst_58 {dimension_numbers = #tpu.dot_dimension_numbers<[1], [0], [0], [1], [0, 0, 1, 1], [], []>} : vector<4x4xbf16>, vector<4x80xbf16>, vector<4x80xf32> -> vector<4x80xf32>
    %84 = arith.addf %79, %83 : vector<4x80xf32>
    %85 = vector.extract_strided_slice %3 {offsets = [0, 21], sizes = [4, 80], strides = [1, 1]} : vector<4x110xbf16> to vector<4x80xbf16>
    %c16 = arith.constant 16 : index
    %c0_59 = arith.constant 0 : index
    %c0_60 = arith.constant 0 : index
    %86 = vector.load %arg5[%c16, %c0_59, %c0_60] : memref<27x4x4xbf16, #tpu.memory_space<vmem>>, vector<1x4x4xbf16>
    %87 = vector.shape_cast %86 : vector<1x4x4xbf16> to vector<4x4xbf16>
    %cst_61 = arith.constant dense<0.000000e+00> : vector<4x80xf32>
    %88 = tpu.matmul %87, %85, %cst_61 {dimension_numbers = #tpu.dot_dimension_numbers<[1], [0], [0], [1], [0, 0, 1, 1], [], []>} : vector<4x4xbf16>, vector<4x80xbf16>, vector<4x80xf32> -> vector<4x80xf32>
    %89 = arith.addf %84, %88 : vector<4x80xf32>
    %90 = vector.extract_strided_slice %3 {offsets = [0, 22], sizes = [4, 80], strides = [1, 1]} : vector<4x110xbf16> to vector<4x80xbf16>
    %c17 = arith.constant 17 : index
    %c0_62 = arith.constant 0 : index
    %c0_63 = arith.constant 0 : index
    %91 = vector.load %arg5[%c17, %c0_62, %c0_63] : memref<27x4x4xbf16, #tpu.memory_space<vmem>>, vector<1x4x4xbf16>
    %92 = vector.shape_cast %91 : vector<1x4x4xbf16> to vector<4x4xbf16>
    %cst_64 = arith.constant dense<0.000000e+00> : vector<4x80xf32>
    %93 = tpu.matmul %92, %90, %cst_64 {dimension_numbers = #tpu.dot_dimension_numbers<[1], [0], [0], [1], [0, 0, 1, 1], [], []>} : vector<4x4xbf16>, vector<4x80xbf16>, vector<4x80xf32> -> vector<4x80xf32>
    %94 = arith.addf %89, %93 : vector<4x80xf32>
    %95 = vector.extract_strided_slice %5 {offsets = [0, 0], sizes = [4, 80], strides = [1, 1]} : vector<4x110xbf16> to vector<4x80xbf16>
    %c18 = arith.constant 18 : index
    %c0_65 = arith.constant 0 : index
    %c0_66 = arith.constant 0 : index
    %96 = vector.load %arg5[%c18, %c0_65, %c0_66] : memref<27x4x4xbf16, #tpu.memory_space<vmem>>, vector<1x4x4xbf16>
    %97 = vector.shape_cast %96 : vector<1x4x4xbf16> to vector<4x4xbf16>
    %cst_67 = arith.constant dense<0.000000e+00> : vector<4x80xf32>
    %98 = tpu.matmul %97, %95, %cst_67 {dimension_numbers = #tpu.dot_dimension_numbers<[1], [0], [0], [1], [0, 0, 1, 1], [], []>} : vector<4x4xbf16>, vector<4x80xbf16>, vector<4x80xf32> -> vector<4x80xf32>
    %99 = arith.addf %94, %98 : vector<4x80xf32>
    %100 = vector.extract_strided_slice %5 {offsets = [0, 1], sizes = [4, 80], strides = [1, 1]} : vector<4x110xbf16> to vector<4x80xbf16>
    %c19 = arith.constant 19 : index
    %c0_68 = arith.constant 0 : index
    %c0_69 = arith.constant 0 : index
    %101 = vector.load %arg5[%c19, %c0_68, %c0_69] : memref<27x4x4xbf16, #tpu.memory_space<vmem>>, vector<1x4x4xbf16>
    %102 = vector.shape_cast %101 : vector<1x4x4xbf16> to vector<4x4xbf16>
    %cst_70 = arith.constant dense<0.000000e+00> : vector<4x80xf32>
    %103 = tpu.matmul %102, %100, %cst_70 {dimension_numbers = #tpu.dot_dimension_numbers<[1], [0], [0], [1], [0, 0, 1, 1], [], []>} : vector<4x4xbf16>, vector<4x80xbf16>, vector<4x80xf32> -> vector<4x80xf32>
    %104 = arith.addf %99, %103 : vector<4x80xf32>
    %105 = vector.extract_strided_slice %5 {offsets = [0, 2], sizes = [4, 80], strides = [1, 1]} : vector<4x110xbf16> to vector<4x80xbf16>
    %c20 = arith.constant 20 : index
    %c0_71 = arith.constant 0 : index
    %c0_72 = arith.constant 0 : index
    %106 = vector.load %arg5[%c20, %c0_71, %c0_72] : memref<27x4x4xbf16, #tpu.memory_space<vmem>>, vector<1x4x4xbf16>
    %107 = vector.shape_cast %106 : vector<1x4x4xbf16> to vector<4x4xbf16>
    %cst_73 = arith.constant dense<0.000000e+00> : vector<4x80xf32>
    %108 = tpu.matmul %107, %105, %cst_73 {dimension_numbers = #tpu.dot_dimension_numbers<[1], [0], [0], [1], [0, 0, 1, 1], [], []>} : vector<4x4xbf16>, vector<4x80xbf16>, vector<4x80xf32> -> vector<4x80xf32>
    %109 = arith.addf %104, %108 : vector<4x80xf32>
    %110 = vector.extract_strided_slice %5 {offsets = [0, 10], sizes = [4, 80], strides = [1, 1]} : vector<4x110xbf16> to vector<4x80xbf16>
    %c21 = arith.constant 21 : index
    %c0_74 = arith.constant 0 : index
    %c0_75 = arith.constant 0 : index
    %111 = vector.load %arg5[%c21, %c0_74, %c0_75] : memref<27x4x4xbf16, #tpu.memory_space<vmem>>, vector<1x4x4xbf16>
    %112 = vector.shape_cast %111 : vector<1x4x4xbf16> to vector<4x4xbf16>
    %cst_76 = arith.constant dense<0.000000e+00> : vector<4x80xf32>
    %113 = tpu.matmul %112, %110, %cst_76 {dimension_numbers = #tpu.dot_dimension_numbers<[1], [0], [0], [1], [0, 0, 1, 1], [], []>} : vector<4x4xbf16>, vector<4x80xbf16>, vector<4x80xf32> -> vector<4x80xf32>
    %114 = arith.addf %109, %113 : vector<4x80xf32>
    %115 = vector.extract_strided_slice %5 {offsets = [0, 11], sizes = [4, 80], strides = [1, 1]} : vector<4x110xbf16> to vector<4x80xbf16>
    %c22 = arith.constant 22 : index
    %c0_77 = arith.constant 0 : index
    %c0_78 = arith.constant 0 : index
    %116 = vector.load %arg5[%c22, %c0_77, %c0_78] : memref<27x4x4xbf16, #tpu.memory_space<vmem>>, vector<1x4x4xbf16>
    %117 = vector.shape_cast %116 : vector<1x4x4xbf16> to vector<4x4xbf16>
    %cst_79 = arith.constant dense<0.000000e+00> : vector<4x80xf32>
    %118 = tpu.matmul %117, %115, %cst_79 {dimension_numbers = #tpu.dot_dimension_numbers<[1], [0], [0], [1], [0, 0, 1, 1], [], []>} : vector<4x4xbf16>, vector<4x80xbf16>, vector<4x80xf32> -> vector<4x80xf32>
    %119 = arith.addf %114, %118 : vector<4x80xf32>
    %120 = vector.extract_strided_slice %5 {offsets = [0, 12], sizes = [4, 80], strides = [1, 1]} : vector<4x110xbf16> to vector<4x80xbf16>
    %c23 = arith.constant 23 : index
    %c0_80 = arith.constant 0 : index
    %c0_81 = arith.constant 0 : index
    %121 = vector.load %arg5[%c23, %c0_80, %c0_81] : memref<27x4x4xbf16, #tpu.memory_space<vmem>>, vector<1x4x4xbf16>
    %122 = vector.shape_cast %121 : vector<1x4x4xbf16> to vector<4x4xbf16>
    %cst_82 = arith.constant dense<0.000000e+00> : vector<4x80xf32>
    %123 = tpu.matmul %122, %120, %cst_82 {dimension_numbers = #tpu.dot_dimension_numbers<[1], [0], [0], [1], [0, 0, 1, 1], [], []>} : vector<4x4xbf16>, vector<4x80xbf16>, vector<4x80xf32> -> vector<4x80xf32>
    %124 = arith.addf %119, %123 : vector<4x80xf32>
    %125 = vector.extract_strided_slice %5 {offsets = [0, 20], sizes = [4, 80], strides = [1, 1]} : vector<4x110xbf16> to vector<4x80xbf16>
    %c24 = arith.constant 24 : index
    %c0_83 = arith.constant 0 : index
    %c0_84 = arith.constant 0 : index
    %126 = vector.load %arg5[%c24, %c0_83, %c0_84] : memref<27x4x4xbf16, #tpu.memory_space<vmem>>, vector<1x4x4xbf16>
    %127 = vector.shape_cast %126 : vector<1x4x4xbf16> to vector<4x4xbf16>
    %cst_85 = arith.constant dense<0.000000e+00> : vector<4x80xf32>
    %128 = tpu.matmul %127, %125, %cst_85 {dimension_numbers = #tpu.dot_dimension_numbers<[1], [0], [0], [1], [0, 0, 1, 1], [], []>} : vector<4x4xbf16>, vector<4x80xbf16>, vector<4x80xf32> -> vector<4x80xf32>
    %129 = arith.addf %124, %128 : vector<4x80xf32>
    %130 = vector.extract_strided_slice %5 {offsets = [0, 21], sizes = [4, 80], strides = [1, 1]} : vector<4x110xbf16> to vector<4x80xbf16>
    %c25 = arith.constant 25 : index
    %c0_86 = arith.constant 0 : index
    %c0_87 = arith.constant 0 : index
    %131 = vector.load %arg5[%c25, %c0_86, %c0_87] : memref<27x4x4xbf16, #tpu.memory_space<vmem>>, vector<1x4x4xbf16>
    %132 = vector.shape_cast %131 : vector<1x4x4xbf16> to vector<4x4xbf16>
    %cst_88 = arith.constant dense<0.000000e+00> : vector<4x80xf32>
    %133 = tpu.matmul %132, %130, %cst_88 {dimension_numbers = #tpu.dot_dimension_numbers<[1], [0], [0], [1], [0, 0, 1, 1], [], []>} : vector<4x4xbf16>, vector<4x80xbf16>, vector<4x80xf32> -> vector<4x80xf32>
    %134 = arith.addf %129, %133 : vector<4x80xf32>
    %135 = vector.extract_strided_slice %5 {offsets = [0, 22], sizes = [4, 80], strides = [1, 1]} : vector<4x110xbf16> to vector<4x80xbf16>
    %c26 = arith.constant 26 : index
    %c0_89 = arith.constant 0 : index
    %c0_90 = arith.constant 0 : index
    %136 = vector.load %arg5[%c26, %c0_89, %c0_90] : memref<27x4x4xbf16, #tpu.memory_space<vmem>>, vector<1x4x4xbf16>
    %137 = vector.shape_cast %136 : vector<1x4x4xbf16> to vector<4x4xbf16>
    %cst_91 = arith.constant dense<0.000000e+00> : vector<4x80xf32>
    %138 = tpu.matmul %137, %135, %cst_91 {dimension_numbers = #tpu.dot_dimension_numbers<[1], [0], [0], [1], [0, 0, 1, 1], [], []>} : vector<4x4xbf16>, vector<4x80xbf16>, vector<4x80xf32> -> vector<4x80xf32>
    %139 = arith.addf %134, %138 : vector<4x80xf32>
    %c0_92 = arith.constant 0 : index
    %c0_93 = arith.constant 0 : index
    %140 = vector.load %arg6[%c0_92, %c0_93] : memref<4x1xf32, #tpu.memory_space<vmem>>, vector<4x1xf32>
    %141 = vector.broadcast %140 : vector<4x1xf32> to vector<4x80xf32>
    %142 = arith.addf %139, %141 : vector<4x80xf32>
    %cst_94 = arith.constant 0.000000e+00 : f32
    %143 = vector.broadcast %cst_94 : f32 to vector<4x80xf32>
    %144 = arith.maximumf %142, %143 : vector<4x80xf32>
    %145 = vector.extract_strided_slice %144 {offsets = [0, 0], sizes = [1, 80], strides = [1, 1]} : vector<4x80xf32> to vector<1x80xf32>
    %c0_95 = arith.constant 0 : index
    %c0_96 = arith.constant 0 : index
    %146 = memref.load %arg7[%c0_95, %c0_96] : memref<2x4xf32, #tpu.memory_space<smem>>
    %147 = vector.broadcast %146 : f32 to vector<1x80xf32>
    %148 = arith.mulf %145, %147 : vector<1x80xf32>
    %149 = vector.extract_strided_slice %144 {offsets = [1, 0], sizes = [1, 80], strides = [1, 1]} : vector<4x80xf32> to vector<1x80xf32>
    %c0_97 = arith.constant 0 : index
    %c1_98 = arith.constant 1 : index
    %150 = memref.load %arg7[%c0_97, %c1_98] : memref<2x4xf32, #tpu.memory_space<smem>>
    %151 = vector.broadcast %150 : f32 to vector<1x80xf32>
    %152 = arith.mulf %149, %151 : vector<1x80xf32>
    %153 = arith.addf %148, %152 : vector<1x80xf32>
    %154 = vector.extract_strided_slice %144 {offsets = [2, 0], sizes = [1, 80], strides = [1, 1]} : vector<4x80xf32> to vector<1x80xf32>
    %c0_99 = arith.constant 0 : index
    %c2_100 = arith.constant 2 : index
    %155 = memref.load %arg7[%c0_99, %c2_100] : memref<2x4xf32, #tpu.memory_space<smem>>
    %156 = vector.broadcast %155 : f32 to vector<1x80xf32>
    %157 = arith.mulf %154, %156 : vector<1x80xf32>
    %158 = arith.addf %153, %157 : vector<1x80xf32>
    %159 = vector.extract_strided_slice %144 {offsets = [3, 0], sizes = [1, 80], strides = [1, 1]} : vector<4x80xf32> to vector<1x80xf32>
    %c0_101 = arith.constant 0 : index
    %c3_102 = arith.constant 3 : index
    %160 = memref.load %arg7[%c0_101, %c3_102] : memref<2x4xf32, #tpu.memory_space<smem>>
    %161 = vector.broadcast %160 : f32 to vector<1x80xf32>
    %162 = arith.mulf %159, %161 : vector<1x80xf32>
    %163 = arith.addf %158, %162 : vector<1x80xf32>
    %c0_103 = arith.constant 0 : index
    %164 = memref.load %arg8[%c0_103] : memref<2xf32, #tpu.memory_space<smem>>
    %165 = vector.broadcast %164 : f32 to vector<1x80xf32>
    %166 = arith.addf %163, %165 : vector<1x80xf32>
    %167 = vector.extract_strided_slice %144 {offsets = [0, 0], sizes = [1, 80], strides = [1, 1]} : vector<4x80xf32> to vector<1x80xf32>
    %c1_104 = arith.constant 1 : index
    %c0_105 = arith.constant 0 : index
    %168 = memref.load %arg7[%c1_104, %c0_105] : memref<2x4xf32, #tpu.memory_space<smem>>
    %169 = vector.broadcast %168 : f32 to vector<1x80xf32>
    %170 = arith.mulf %167, %169 : vector<1x80xf32>
    %171 = vector.extract_strided_slice %144 {offsets = [1, 0], sizes = [1, 80], strides = [1, 1]} : vector<4x80xf32> to vector<1x80xf32>
    %c1_106 = arith.constant 1 : index
    %c1_107 = arith.constant 1 : index
    %172 = memref.load %arg7[%c1_106, %c1_107] : memref<2x4xf32, #tpu.memory_space<smem>>
    %173 = vector.broadcast %172 : f32 to vector<1x80xf32>
    %174 = arith.mulf %171, %173 : vector<1x80xf32>
    %175 = arith.addf %170, %174 : vector<1x80xf32>
    %176 = vector.extract_strided_slice %144 {offsets = [2, 0], sizes = [1, 80], strides = [1, 1]} : vector<4x80xf32> to vector<1x80xf32>
    %c1_108 = arith.constant 1 : index
    %c2_109 = arith.constant 2 : index
    %177 = memref.load %arg7[%c1_108, %c2_109] : memref<2x4xf32, #tpu.memory_space<smem>>
    %178 = vector.broadcast %177 : f32 to vector<1x80xf32>
    %179 = arith.mulf %176, %178 : vector<1x80xf32>
    %180 = arith.addf %175, %179 : vector<1x80xf32>
    %181 = vector.extract_strided_slice %144 {offsets = [3, 0], sizes = [1, 80], strides = [1, 1]} : vector<4x80xf32> to vector<1x80xf32>
    %c1_110 = arith.constant 1 : index
    %c3_111 = arith.constant 3 : index
    %182 = memref.load %arg7[%c1_110, %c3_111] : memref<2x4xf32, #tpu.memory_space<smem>>
    %183 = vector.broadcast %182 : f32 to vector<1x80xf32>
    %184 = arith.mulf %181, %183 : vector<1x80xf32>
    %185 = arith.addf %180, %184 : vector<1x80xf32>
    %c1_112 = arith.constant 1 : index
    %186 = memref.load %arg8[%c1_112] : memref<2xf32, #tpu.memory_space<smem>>
    %187 = vector.broadcast %186 : f32 to vector<1x80xf32>
    %188 = arith.addf %185, %187 : vector<1x80xf32>
    %189 = tpu.concatenate %166, %188 in 0 : vector<1x80xf32>, vector<1x80xf32> -> vector<2x80xf32>
    %c0_113 = arith.constant 0 : index
    %c0_114 = arith.constant 0 : index
    %c0_115 = arith.constant 0 : index
    %c0_116 = arith.constant 0 : index
    %190 = vector.load %arg9[%c0_113, %c0_114, %c0_115, %c0_116] : memref<1x1x2x80xf32, #tpu.memory_space<vmem>>, vector<1x1x2x80xf32>
    %191 = vector.shape_cast %190 : vector<1x1x2x80xf32> to vector<2x80xf32>
    %192 = vector.shape_cast %189 : vector<2x80xf32> to vector<1x1x2x80xf32>
    tpu.vector_store %arg9[%c0_113, %c0_114, %c0_115, %c0_116], %192 {strides = array<i32>} : memref<1x1x2x80xf32, #tpu.memory_space<vmem>>, vector<1x1x2x80xf32>,
    return
  }
  func.func @transform_0(%arg0: i32, %arg1: i32) -> (i32, i32, i32, i32) {
    %c0_i32 = arith.constant 0 : i32
    %c0_i32_0 = arith.constant 0 : i32
    %c0_i32_1 = arith.constant 0 : i32
    return %arg0, %arg1, %c0_i32, %c0_i32_0 : i32, i32, i32, i32
  }
  func.func @transform_1(%arg0: i32, %arg1: i32) -> (i32, i32, i32, i32) {
    %c1_i32 = arith.constant 1 : i32
    %0 = arith.addi %arg1, %c1_i32 : i32
    %c0_i32 = arith.constant 0 : i32
    %c0_i32_0 = arith.constant 0 : i32
    %c0_i32_1 = arith.constant 0 : i32
    return %arg0, %0, %c0_i32, %c0_i32_0 : i32, i32, i32, i32
  }
  func.func @transform_2(%arg0: i32, %arg1: i32) -> (i32, i32, i32, i32) {
    %c2_i32 = arith.constant 2 : i32
    %0 = arith.addi %arg1, %c2_i32 : i32
    %c0_i32 = arith.constant 0 : i32
    %c0_i32_0 = arith.constant 0 : i32
    %c0_i32_1 = arith.constant 0 : i32
    return %arg0, %0, %c0_i32, %c0_i32_0 : i32, i32, i32, i32
  }
  func.func @transform_3(%arg0: i32, %arg1: i32) -> (i32, i32, i32) {
    %c0_i32 = arith.constant 0 : i32
    %c0_i32_0 = arith.constant 0 : i32
    %c0_i32_1 = arith.constant 0 : i32
    %c0_i32_2 = arith.constant 0 : i32
    return %c0_i32, %c0_i32_0, %c0_i32_1 : i32, i32, i32
  }
  func.func @transform_4(%arg0: i32, %arg1: i32) -> (i32, i32) {
    %c0_i32 = arith.constant 0 : i32
    %c0_i32_0 = arith.constant 0 : i32
    %c0_i32_1 = arith.constant 0 : i32
    return %c0_i32, %c0_i32_0 : i32, i32
  }
  func.func @transform_5(%arg0: i32, %arg1: i32) -> (i32, i32) {
    %c0_i32 = arith.constant 0 : i32
    %c0_i32_0 = arith.constant 0 : i32
    %c0_i32_1 = arith.constant 0 : i32
    return %c0_i32, %c0_i32_0 : i32, i32
  }
  func.func @transform_6(%arg0: i32, %arg1: i32) -> i32 {
    %c0_i32 = arith.constant 0 : i32
    %c0_i32_0 = arith.constant 0 : i32
    return %c0_i32 : i32
  }
  func.func @transform_7(%arg0: i32, %arg1: i32) -> (i32, i32, i32, i32) {
    %c0_i32 = arith.constant 0 : i32
    %c0_i32_0 = arith.constant 0 : i32
    %c0_i32_1 = arith.constant 0 : i32
    return %arg0, %arg1, %c0_i32, %c0_i32_0 : i32, i32, i32, i32
  }
}

</mosaic_0001>

<bundles_post_ra>
// kernel: tpu_custom_call.1
= control target key start
LH: loop header
LB: loop body
LE: loop exit
PB: predicated region body
PF: predicated region fallthrough
CT: control target
= control target key end

     0   :  { %s3392_s0 = inlined_call_operand.vmem [shape: bf16[2,10,4,110], index: 0, kind: input, shape index: {}]   ;;  %s3393_s1 = inlined_call_operand.hbm [shape: bf16[2,10,4,110], index: 1, kind: input, shape index: {}]   ;;  %s3394_s2 = inlined_call_operand.hbm [shape: bf16[2,10,4,110], index: 2, kind: input, shape index: {}]   ;;  %s3395_s3 = inlined_call_operand.vmem [shape: bf16[27,4,4], index: 3, kind: input, shape index: {}]   ;;  %s3396_s4 = inlined_call_operand.vmem [shape: f32[4,1], index: 4, kind: input, shape index: {}]   ;;  %s3397_s5 = inlined_call_operand.vmem [shape: f32[2,4], index: 5, kind: input, shape index: {}]   ;;  %s3398_s6 = inlined_call_operand.vmem [shape: f32[2], index: 6, kind: input, shape index: {}]   ;;  %s3399_s7 = inlined_call_operand.hbm [shape: f32[2,8,2,80], index: 7, kind: output, shape index: {}]  }
   0x1   :  { %3420 = sst [smem:[#allocation26_spill]] %s3392_s0 }
   0x2   :  { %3421 = sst [smem:[#allocation27_spill]] %s3395_s3 }
   0x3   :  { %3422 = sst [smem:[#allocation28_spill]] %s3396_s4 }
   0x4   :  { %3423 = sst [smem:[#allocation29_spill]] %s3397_s5 }
   0x5   :  { %3424 = sst [smem:[#allocation30_spill]] %s3398_s6 }
   0x6   :  { %3425 = sst [smem:[#allocation31_spill]] %s3399_s7 }
   0x7   :  { %12 = vsyncpa [#allocation3], 0 }
   0x8   :  { %14 = vsyncpa [#allocation3 + $0x1], 0 }
   0x9   :  { %15 = vsyncpa [#allocation7], 0 }
   0xa   :  { %17 = vsyncpa [#allocation7 + $0x1], 0 }
   0xb   :  { %18 = vsyncpa [#allocation5], 0 }
   0xc   :  { %19 = vsyncpa [#allocation10], 0 }
   0xd   :  { %20 = vsyncpa [#allocation4], 0 }
   0xe   :  { %22 = vsyncpa [#allocation4 + $0x1], 0  ;;  %s2822_s24 = smov 0   ;;  %s2824_s25 = smov 0  }
   0xf   :  { %s2826_s26 = smov 0   ;;  %s2828_s27 = smov 0  }
  0x10   :  { %s2830_s28 = smov 0   ;;  %s2832_s29 = smov 0  }
  0x11   :  { %s2834_s30 = smov 0   ;;  %s2836_s8 = smov 0  }
  0x12   :  { %s2838_s9 = smov 0   ;;  %s2840_s10 = smov 0  }
  0x13   :  { %s2842_s11 = smov 0   ;;  %s2844_s12 = smov 0  }
  0x14   :  { %s2846_s13 = smov 0   ;;  %s2848_s14 = smov 0  }
  0x15 LB: > { %3426 = sst [smem:[#allocation17_spill]] %s2711_s24  ;;  %s2054_s15 = sadd.s32 4294967295, %s2763_s14   ;;  %s2763_s14 = sphi %s2848_s14, %s28_s14   ;;  %s2759_s13 = sphi %s2846_s13, %s3481_s13   ;;  %s2755_s12 = sphi %s2844_s12, %s3480_s12   ;;  %s2751_s11 = sphi %s2842_s11, %s3479_s11   ;;  %s2747_s10 = sphi %s2840_s10, %s3478_s10   ;;  %s2743_s9 = sphi %s2838_s9, %s3477_s9   ;;  %s2739_s8 = sphi %s2836_s8, %s3476_s8   ;;  %s2735_s30 = sphi %s2834_s30, %s3475_s30   ;;  %s2731_s29 = sphi %s2832_s29, %s3474_s29   ;;  %s2727_s28 = sphi %s2830_s28, %s3473_s28   ;;  %s2723_s27 = sphi %s2828_s27, %s3472_s27   ;;  %s2719_s26 = sphi %s2826_s26, %s3471_s26   ;;  %s2715_s25 = sphi %s2824_s25, %s3470_s25   ;;  %s2711_s24 = sphi %s2822_s24, %s3466_s24  }
  0x16   : > { %3427 = sst [smem:[#allocation18_spill]] %s2715_s25  ;;  %s2055_s16 = sadd.s32 4294967294, %s2763_s14  }
  0x17   : > { %3428 = sst [smem:[#allocation19_spill]] %s2747_s10  ;;  %p2894_p0 = scmp.eq.s32.totalorder %s2054_s15, 0 }
  0x18   : > { %3429 = sst [smem:[#allocation20_spill]] %s2751_s11  ;;  %p231_p1 = scmp.ne.s32.totalorder %s2719_s26, %s2715_s25 }
  0x19   : > { %s3430_s17 = scalar_select %p2894_p0, 1, 0 }
  0x1a   : > { %p232_p2 = scmp.eq.s32.totalorder %s2054_s15, 15  ;;  %p237_p3 = scmp.ne.s32.totalorder %s2715_s25, %s2711_s24 }
  0x1b   : > { %p238_p4 = scmp.eq.s32.totalorder %s2055_s16, 15  ;;  %p2056_p5 = scmp.ge.s32.totalorder %s2763_s14, 1 }
  0x1c   : > { %p2903_p6 = por %p232_p2, %p231_p1  ;;  %p245_p7 = scmp.lt.s32.totalorder %s2763_s14, 17 }
  0x1d   : > { %p2908_p8 = por %p238_p4, %p237_p3  ;;  %s3436_s5 = sld [smem:[#allocation29_spill]] }
  0x1e   : > { %s3431_s18 = scalar_select %p2903_p6, 1, 0 }
  0x1f   : > { %s3433_s19 = scalar_select %p2908_p8, 1, 0 }
  0x20   : > { %3432 = sst [smem:[#allocation21_spill]] %s3431_s18  ;;  %p2912_p9 = pnand %p2056_p5, %p245_p7 }
  0x21   : > { %3434 = sst [smem:[#allocation22_spill]] %s3433_s19 }
  0x22   : > { %s3435_s20 = scalar_select %p2912_p9, 1, 0 }
  0x23   : > { %s264_s23 = sshll.u32 %s3436_s5, 4  ;;  %p2368_p10 = pneg %p2912_p9  ;;  %s265_s23 = int_to_ptr.vmem [resolvable:$true] %s264_s23 }
  0x24   : > { %s3437_s6 = sld [smem:[#allocation30_spill]]  ;;  %s2519_s19 = scalar_lea.vmem %s265_s23, 32 }
  0x25   : > { %p2926_p11 = pnand %p2368_p10, %p2894_p0  ;;  %p2520_p12 = scmp.ne.s32.totalorder %s265_s23, %s2519_s19 }
  0x26   : > { %p2527_p3 = scmp.lt.s32.totalorder %s265_s23, %s265_s23  ;;  %p2528_p4 = scmp.lt.s32.totalorder %s2519_s19, %s2519_s19 }
  0x27   : > { %p2521_p13 = pneg %p2926_p11 }
  0x28   : > { %p2529_p5 = por %p2528_p4, %p2527_p3 }
  0x29   : > { %p2522_p1 = pnand %p2521_p13, %p2520_p12 }
  0x2a   : > { %s275_s24 = sshll.u32 %s3437_s6, 4  ;;  %s276_s24 = int_to_ptr.vmem [resolvable:$true] %s275_s24 }
  0x2b   : > { %p2523_p2 = pneg %p2522_p1 }
  0x2d   : > { %p2530_p7 = pnand %p2529_p5, %p2523_p2 }
  0x2f   : > { %2533 = shalt.err (!%p2530_p7)
}
  0x30   : > { %s2765_s21 = smov [#allocation8]   ;;  %s2534_s22 = scalar_lea.vmem %s276_s24, 16 }
  0x31   : > { %2371 = dma.vmem_to_smem (!%p2926_p11), %s265_s23, 32, %s2765_s21, [#allocation5]  }
  0x32   : > { %p2535_p10 = scmp.ne.s32.totalorder %s276_s24, %s2534_s22  ;;  %p2542_p9 = scmp.lt.s32.totalorder %s276_s24, %s276_s24 }
  0x33   : > { %p2543_p0 = scmp.lt.s32.totalorder %s2534_s22, %s2534_s22 }
  0x34   : > { %p2537_p8 = pnand %p2535_p10, %p2521_p13 }
  0x35   : > { %p2544_p12 = por %p2543_p0, %p2542_p9 }
  0x36   : > { %p2538_p6 = pneg %p2537_p8 }
  0x38   : > { %p2545_p1 = pnand %p2544_p12, %p2538_p6 }
  0x3a   : > { %2548 = shalt.err (!%p2545_p1)
}
  0x3b   : > { %s2766_s15 = smov [#allocation9]   ;;  %s37_s19 = sadd.s32 1, %s2755_s12 }
  0x3c   : > { %2374 = dma.vmem_to_smem (!%p2926_p11), %s276_s24, 16, %s2766_s15, [#allocation10]  }
  0x3d   : > { %p38_p0 = scmp.ge.s32.totalorder %s37_s19, 8  ;;  %s40_s23 = sadd.s32 1, %s2759_s13 }
  0x3e   : > { %s79_s16 = sadd.s32 1, %s2743_s9  ;;  %p86_p6 = scmp.ne.s32.totalorder %s2743_s9, %s2739_s8 }
  0x3f   : > { %s2941_s7 = scalar_select %p38_p0, 0, %s37_s19  }
  0x40   : > { %s3483_s23 = smov (!%p38_p0, %s40_s23), %s2759_s13  ;;  %p3419_p8 = scmp.eq.s32.totalorder %s2763_s14, 0 }
  0x41   : > { %3439 = sst [smem:[#allocation23_spill]] %s2941_s7  ;;  %s73_s21 = sadd.s32 1, %s2941_s7 }
  0x42   : > { %p42_p9 = scmp.ge.s32.totalorder %s3483_s23, 2  ;;  %s75_s22 = ssub.s32 %s37_s19, %s73_s21 }
  0x43   : > { %p2948_p11 = por %p3419_p8, %p86_p6  ;;  %p92_p13 = scmp.ne.s32.totalorder %s2739_s8, %s2735_s30 }
  0x44   : > { %s3485_s23 = smov (%p42_p9, %s3483_s23), 0  ;;  %p3442_p2 = scmp.ne.s32.totalorder %s3430_s17, 0 }
  0x45   : > { %3441 = sst [smem:[#allocation24_spill]] %s3485_s23  ;;  %s102_s5 = sadd.s32 2, %s2755_s12 }
  0x46   : > { %p2958_p3 = por %p3442_p2, %p92_p13  ;;  %s74_s19 = ssub.s32 %s2759_s13, %s3485_s23 }
  0x47   : > { %s103_s21 = sadd.s32 2, %s2941_s7  ;;  %s76_s6 = sor.u32 %s75_s22, %s74_s19 }
  0x48   : > { %s3443_s15 = scalar_select %p2958_p3, 1, 0 }
  0x49   : > { %s105_s18 = ssub.s32 %s102_s5, %s103_s21  ;;  %p77_p4 = scmp.eq.s32.totalorder %s76_s6, 0 }
  0x4a   : > { %3444 = sst [smem:[#allocation25_spill]] %s3443_s15  ;;  %s106_s30 = sor.u32 %s105_s18, %s74_s19 }
  0x4b   : > { %p2966_p5 = scmp.eq.s32.totalorder %s106_s30, 0  ;;  %s217_s4 = ssub.s32 %s2755_s12, %s2941_s7 }
  0x4c   : > { %s2973_s3 = scalar_select %p77_p4, %s2743_s9, %s79_s16  }
  0x4d   : > { %s218_s0 = sor.u32 %s217_s4, %s74_s19  ;;  %s221_s10 = sadd.s32 1, %s2719_s26 }
  0x4e   : > { %p219_p7 = scmp.eq.s32.totalorder %s218_s0, 0  ;;  %p2388_p10 = scmp.lt.s32.totalorder %s2763_s14, 16 }
  0x4f   : > { %s297_s23 = sand.u32 1, %s2743_s9   ;;  %s1940_s11 = smul.u32 10, %s2759_s13 }
  0x50   : > { %s2980_s15 = scalar_select %p219_p7, %s2719_s26, %s221_s10  }
  0x51   : > { %s2060_s5 = sshll.u32 %s297_s23, 1  ;;  %s2983_s6 = sadd.s32 %s2755_s12, %s1940_s11 }
  0x52   : > { %s2061_s18 = sshll.u32 %s2983_s6, 5  ;;  %s301_s22 = scalar_lea.vmem [#allocation2], %s2060_s5 }
  0x53   : > { %s311_s21 = sshll.u32 %s301_s22, 4  ;;  %s1943_s7 = scalar_lea.hbm %s3393_s1, %s2061_s18  ;;  %s312_s21 = int_to_ptr.vmem [resolvable:$true] %s311_s21 }
  0x54   : > { %s1944_s4 = scalar_lea.hbm %s1943_s7, 32  ;;  %p2993_p12 = pnand %p2388_p10, %p2948_p11 }
  0x55   : > { %s298_s10 = scalar_lea.sflag [#allocation3], %s297_s23  ;;  %s2562_s11 = scalar_lea.vmem %s312_s21, 32 }
  0x56   : > { %p2551_p1 = pneg %p2993_p12  ;;  %p2563_p0 = scmp.ne.s32.totalorder %s312_s21, %s2562_s11 }
  0x57   : > { %s2767_s19 = smov [#allocation2]  }
  0x58   : > { %p2565_p6 = pnand %p2563_p0, %p2551_p1  ;;  %s2567_s5 = sshll.u32 %s2767_s19, 4  ;;  %s2568_s5 = int_to_ptr.vmem [resolvable:$false] %s2567_s5 }
  0x59   : > { %s2569_s6 = scalar_lea.vmem %s2568_s5, 64  ;;  %p2570_p13 = scmp.lt.s32.totalorder %s312_s21, %s2568_s5 }
  0x5a   : > { %p2566_p9 = pneg %p2565_p6  ;;  %p2571_p4 = scmp.lt.s32.totalorder %s2569_s6, %s2562_s11 }
  0x5c   : > { %p2572_p7 = por %p2571_p4, %p2570_p13 }
  0x5e   : > { %p2573_p8 = pnand %p2572_p7, %p2566_p9 }
  0x60   : > { %2576 = shalt.err (!%p2573_p8)
}
  0x61   : > { %2378 = dma.hbm_to_vmem [thread:$0]  (!%p2993_p12), %s1944_s4, 32, %s312_s21, %s298_s10  }
  0x62   : > { %s109_s23 = sadd.s32 1, %s2731_s29  ;;  %p116_p11 = scmp.ne.s32.totalorder %s2731_s29, %s2727_s28 }
  0x63   : > { %s3005_s7 = scalar_select %p2966_p5, %s2731_s29, %s109_s23  }
  0x64   : > { %p122_p8 = scmp.ne.s32.totalorder %s2727_s28, %s2723_s27  ;;  %s318_s24 = sand.u32 1, %s2731_s29  }
  0x65   : > { %s1951_s16 = scalar_lea.hbm %s3394_s2, %s2061_s18  ;;  %p3447_p1 = scmp.eq.s32.totalorder %s2763_s14, 0 }
  0x66   : > { %p3019_p6 = por %p122_p8, %p3442_p2  ;;  %s2062_s11 = sshll.u32 %s318_s24, 1 }
  0x67   : > { %p118_p0 = por %p116_p11, %p3447_p1  ;;  %s1952_s21 = scalar_lea.hbm %s1951_s16, 64 }
  0x68   : > { %s322_s4 = scalar_lea.vmem [#allocation6], %s2062_s11  ;;  %s319_s27 = scalar_lea.sflag [#allocation7], %s318_s24 }
  0x69   : > { %s332_s25 = sshll.u32 %s322_s4, 4  ;;  %p3025_p5 = pnand %p2388_p10, %p118_p0  ;;  %s333_s25 = int_to_ptr.vmem [resolvable:$true] %s332_s25 }
  0x6a   : > { %s2591_s18 = scalar_lea.vmem %s333_s25, 32  ;;  %s2768_s19 = smov [#allocation6]  }
  0x6b   : > { %p2580_p12 = pneg %p3025_p5  ;;  %p2592_p9 = scmp.ne.s32.totalorder %s333_s25, %s2591_s18 }
  0x6c   : > { %s2596_s5 = sshll.u32 %s2768_s19, 4  ;;  %s2597_s5 = int_to_ptr.vmem [resolvable:$false] %s2596_s5 }
  0x6d   : > { %p2594_p2 = pnand %p2592_p9, %p2580_p12  ;;  %s2598_s6 = scalar_lea.vmem %s2597_s5, 64 }
  0x6e   : > { %p2599_p4 = scmp.lt.s32.totalorder %s333_s25, %s2597_s5  ;;  %p2600_p7 = scmp.lt.s32.totalorder %s2598_s6, %s2591_s18 }
  0x6f   : > { %p2595_p13 = pneg %p2594_p2 }
  0x70   : > { %p2601_p11 = por %p2600_p7, %p2599_p4 }
  0x72   : > { %p2602_p10 = pnand %p2601_p11, %p2595_p13 }
  0x74   : > { %2605 = shalt.err (!%p2602_p10)
}
  0x75   : > { %2381 = dma.hbm_to_vmem [thread:$0]  (!%p3025_p5), %s1952_s21, 32, %s333_s25, %s319_s27  }
  0x76   : > { %p3450_p8 = scmp.ne.s32.totalorder %s3435_s20, 0 }
  0x77   : > { %s343_s24 = sand.u32 (!%p3450_p8), 1, %s2739_s8  }
  0x78   : > { %341 = sbr.rel (%p3450_p8) target bundleno = 605 (0x25d), region = 48  ;;  %s3036_s22 = sshll.u32 (!%p3450_p8), %s343_s24, 1 }
  0x79   : > { %s344_s30 = scalar_lea.sflag (!%p3450_p8), [#allocation3], %s343_s24  ;;  %s347_s16 = scalar_lea.vmem (!%p3450_p8), [#allocation2], %s3036_s22 }
  0x7d   : > { %2690 = dma.done.wait (%p2958_p3), %s344_s30, 32  }
  0x7e   : > { %2692 = vsyncadd (%p2958_p3), %s344_s30, 4294967264  ;;  %s352_s11 = sand.u32 1, %s2727_s28  }
  0x7f   : > { %s3044_s21 = sshll.u32 %s352_s11, 1  ;;  %s353_s20 = scalar_lea.sflag [#allocation7], %s352_s11 }
  0x80   : > { %s356_s4 = scalar_lea.vmem [#allocation6], %s3044_s21 }
  0x81   : > { %2694 = dma.done.wait (%p3019_p6), %s353_s20, 32  }
  0x82   : > { %2696 = vsyncadd (%p3019_p6), %s353_s20, 4294967264  ;;  %p3452_p1 = scmp.ne.s32.totalorder %s3430_s17, 0 }
  0x84   : > { %2698 = dma.done.wait (%p3452_p1), [#allocation5], 32  }
  0x85   : > { %2700 = vsyncadd (%p3452_p1), [#allocation5], 4294967264 }
  0x86   : > { %2702 = dma.done.wait (%p3452_p1), [#allocation10], 16  }
  0x87   : > { %2704 = vsyncadd (%p3452_p1), [#allocation10], 4294967280 }
  0x88   : > { %369 = sfence }
  0x89   : > { %s3453_s25 = sld [smem:[#allocation20_spill]]  ;;  %v430_v0 = vlaneseq  ;;  %v2769_v1 = vmov 1983009808   ;;  %v2770_v4 = vmov 0.0   ;;  %vm2771_vm0 = vmmov 0   ;;  %s2777_s5 = smov 108  }
  0x8a   : > { %s3454_s10 = sld [smem:[#allocation19_spill]]  ;;  %v428_v2 = vunpack.c.l.s4 %v2769_v1  ;;  %2191 = vmatprep.subr.bf16.mxu0 %v2770_v4  ;;  %2197 = vmatprep.subr.bf16.mxu1 %v2770_v4  ;;  %vm440_vm1 = vcmask 1041408   ;;  %vm436_vm2 = vcmask 31744   ;;  %v3084_v11 = vld [vmem:[%s347_s16] sm:$0x3]  ;;  %s2778_s6 = smov 107  }
  0x8b   : > { %v431_v3 = vshrl.u32 %v430_v0, 7  ;;  %2193 = vmatprep.mubr.msk.bf16.mxu0 %vm2771_vm0, %v2770_v4  ;;  %2199 = vmatprep.mubr.msk.bf16.mxu1 %vm2771_vm0, %v2770_v4  ;;  %s3455_s23 = sld [smem:[#allocation26_spill]]  ;;  %v3091_v13 = vld [vmem:[%s356_s4] sm:$0x3]  ;;  %v2780_v16 = vmov 0   ;;  %v893_v37 = vsel %vm440_vm1, %v3084_v11, 0 }
  0x8c   : > { %v429_v5 = vunpack.c.0.s8 %v428_v2  ;;  %s3456_s20 = sld [smem:[#allocation27_spill]]  ;;  %2518 = vset.pattern.permute.xlu0 %v2780_v16  ;;  %vm1882_vm3 = vcmask 1040384   ;;  %vm1884_vm4 = vcmask 648192  }
  0x8d   : > { %s2129_s22 = sld [smem:[#allocation8 + $0x82]] }
  0x8e   : > { %v432_v6 = vsub.s32 %v429_v5, %v431_v3  ;;  %s2127_s16 = sld [smem:[#allocation8 + $0x80]] }
  0x8f   : > { %p409_p3 = scmp.lt.s32.totalorder %s3453_s25, 1  ;;  %s3458_s21 = sld [smem:[#allocation18_spill]] }
  0x90   : > { %p411_p0 = scmp.lt.s32.totalorder %s3454_s10, 9  ;;  %v945_v12 = vrot.slane %v3084_v11, %v432_v6  ;;  %v1410_v14 = vrot.slane %v3091_v13, %v432_v6  ;;  %s2131_s4 = sld [smem:[#allocation9 + $0x1]] }
  0x91   : > { %s410_s0 = scalar_select %p409_p3, %s3453_s25, 1 }
  0x92   : > { %s412_s27 = scalar_select %p411_p0, %s3454_s10, 9  ;;  %v423_v10 = vld [vmem:[%s3456_s20] sm:$0x3]  ;;  %v2071_v21 = vld [vmem:[%s3456_s20 + $0x2] sm:$0x3] }
  0x93   : > { %s2353_s17 = smul.u32 10, %s410_s0  ;;  %s2772_s0 = smov 127   ;;  %v2076_v22 = vld [vmem:[%s3456_s20 + $0x6] sm:$0x3]  ;;  %v2074_v28 = vld [vmem:[%s3456_s20 + $0x4] sm:$0x3] }
  0x94   : > { %v2080_v29 = vld [vmem:[%s3456_s20 + $0xa] sm:$0x3]  ;;  %v2078_v34 = vld [vmem:[%s3456_s20 + $0x8] sm:$0x3]  ;;  %v2084_v35 = vld [vmem:[%s3456_s20 + $0xe] sm:$0x3] }
  0x95   : > { %s414_s18 = sadd.s32 %s2353_s17, %s412_s27  ;;  %s2773_s27 = smov 118   ;;  %v2082_v40 = vld [vmem:[%s3456_s20 + $0xc] sm:$0x3]  ;;  %v2088_v41 = vld [vmem:[%s3456_s20 + $0x12] sm:$0x3] }
  0x96   : > { %s2070_s19 = sshll.u32 %s414_s18, 1  ;;  %s2774_s17 = smov 126   ;;  %v2086_v46 = vld [vmem:[%s3456_s20 + $0x10] sm:$0x3]  ;;  %v2092_v47 = vld [vmem:[%s3456_s20 + $0x16] sm:$0x3] }
  0x97   : > { %s416_s24 = scalar_lea.vmem %s3455_s23, %s2070_s19  ;;  %s2775_s18 = smov 117   ;;  %v2090_v52 = vld [vmem:[%s3456_s20 + $0x14] sm:$0x3]  ;;  %v2096_v53 = vld [vmem:[%s3456_s20 + $0x1a] sm:$0x3] }
  0x98   : > { %v420_v7 = vld [vmem:[%s416_s24] sm:$0x3]  ;;  %s2776_s19 = smov 116   ;;  %s2779_s23 = smov 106   ;;  %v2094_v58 = vld [vmem:[%s3456_s20 + $0x18] sm:$0x3] }
  0x99   : > { %v433_v8 = vrot.slane %v420_v7, %v432_v6  ;;  %v488_v9 = vsel %vm440_vm1, %v420_v7, 0  ;;  %s3457_s24 = sld [smem:[#allocation28_spill]]  ;;  %v2100_v59 = vld [vmem:[%s3456_s20 + $0x1e] sm:$0x3]  ;;  %v2098_v0 = vld [vmem:[%s3456_s20 + $0x1c] sm:$0x3] }
  0x9a   : > { %2198 = vmatpush3.bf16.msra.mxu1 %v488_v9  ;;  %v2104_v1 = vld [vmem:[%s3456_s20 + $0x22] sm:$0x3]  ;;  %v2102_v6 = vld [vmem:[%s3456_s20 + $0x20] sm:$0x3]  ;;  %v2108_v7 = vld [vmem:[%s3456_s20 + $0x26] sm:$0x3] }
  0x9b   : > { %434 = vrot.lane.b32.xlu0 %v433_v8, %s2772_s0  ;;  %583 = vrot.lane.b32.xlu1 %v433_v8, %s2773_s27  ;;  %s406_s30 = sand.u32 1, %s3458_s21   ;;  %s1849_s11 = sld [smem:[#allocation9]] }
  0x9c   : > { %2209 = vmatprep.subr.bf16.mxu1 %v2770_v4 }
  0x9d   : > { %2200 = vmatmul.mubr.msk.bf16.vlgmr.msra.gmra.mxu1 %vm436_vm2, %v423_v10 }
  0x9e   : > { %2211 = vmatprep.mubr.msk.bf16.mxu1 %vm2771_vm0, %v2770_v4 }
  0x9f   : > { %532 = vrot.lane.b32.xlu0 %v433_v8, %s2774_s17  ;;  %634 = vrot.lane.b32.xlu1 %v433_v8, %s2775_s18  ;;  %v1817_v15 = vld [vmem:[%s3457_s24] sm:$0xf]  ;;  %s2130_s24 = sld [smem:[#allocation8 + $0x83]] }
  0xa3   : > { %685 = vrot.lane.b32.xlu0 %v433_v8, %s2776_s19  ;;  %736 = vrot.lane.b32.xlu1 %v433_v8, %s2777_s5 }
  0xa7   : > { %787 = vrot.lane.b32.xlu0 %v433_v8, %s2778_s6  ;;  %838 = vrot.lane.b32.xlu1 %v433_v8, %s2779_s23  ;;  %v1358_v8 = vsel %vm440_vm1, %v3091_v13, 0  ;;  %v2112_v13 = vld [vmem:[%s3456_s20 + $0x2a] sm:$0x3] }
  0xab   : > { %946 = vrot.lane.b32.xlu0 %v945_v12, %s2772_s0  ;;  %997 = vrot.lane.b32.xlu1 %v945_v12, %s2774_s17 }
  0xaf   : > { %1048 = vrot.lane.b32.xlu0 %v945_v12, %s2773_s27  ;;  %1099 = vrot.lane.b32.xlu1 %v945_v12, %s2775_s18 }
  0xb3   : > { %1150 = vrot.lane.b32.xlu0 %v945_v12, %s2776_s19  ;;  %1201 = vrot.lane.b32.xlu1 %v945_v12, %s2777_s5 }
  0xb7   : > { %1252 = vrot.lane.b32.xlu0 %v945_v12, %s2778_s6  ;;  %1303 = vrot.lane.b32.xlu1 %v945_v12, %s2779_s23  ;;  %v2106_v12 = vld [vmem:[%s3456_s20 + $0x24] sm:$0x3] }
  0xbb   : > { %1411 = vrot.lane.b32.xlu0 %v1410_v14, %s2772_s0  ;;  %1462 = vrot.lane.b32.xlu1 %v1410_v14, %s2774_s17  ;;  %s2069_s0 = sshll.u32 %s406_s30, 1 }
  0xbf   : > { %1513 = vrot.lane.b32.xlu0 %v1410_v14, %s2773_s27  ;;  %1564 = vrot.lane.b32.xlu1 %v1410_v14, %s2775_s18  ;;  %s3306_s18 = sld [smem:[#allocation8]]  ;;  %s2133_s27 = sshll.u32 %s3453_s25, 3 }
  0xc0   : > { %s1898_s17 = sadd.s32 %s3454_s10, %s2133_s27  ;;  %s1887_s10 = scalar_lea.sflag [#allocation4], %s406_s30 }
  0xc3   : > { %1615 = vrot.lane.b32.xlu0 %v1410_v14, %s2776_s19  ;;  %1666 = vrot.lane.b32.xlu1 %v1410_v14, %s2777_s5  ;;  %s2124_s19 = sld [smem:[#allocation8 + $0x1]] }
  0xc4   : > { %s2125_s5 = sld [smem:[#allocation8 + $0x2]] }
  0xc7   : > { %1717 = vrot.lane.b32.xlu0 %v1410_v14, %s2778_s6  ;;  %1768 = vrot.lane.b32.xlu1 %v1410_v14, %s2779_s23  ;;  %s3308_s6 = sld [smem:[#allocation8 + $0x3]] }
  0xc8   : > { %s2128_s23 = sld [smem:[#allocation8 + $0x81]] }
  0xcb   : > { %1820 = vperm.xlu0 %2518, %v1817_v15  }
 0x10d   : > { %v435_v17 = vpop.permute.xlu0 %434  ;;  %v584_v18 = vpop.permute.xlu1 %583 }
 0x10e   : > { %v442_v19 = vsel %vm440_vm1, %v435_v17, 0  ;;  %v589_v20 = vsel %vm440_vm1, %v584_v18, 0 }
 0x10f   : > { %2192 = vmatpush3.bf16.msra.mxu0 %v442_v19  ;;  %2210 = vmatpush3.bf16.msra.mxu1 %v589_v20  ;;  %v2110_v19 = vld [vmem:[%s3456_s20 + $0x28] sm:$0x3]  ;;  %v2116_v20 = vld [vmem:[%s3456_s20 + $0x2e] sm:$0x3] }
 0x110   : > { %2203 = vmatprep.subr.bf16.mxu0 %v2770_v4  ;;  %2221 = vmatprep.subr.bf16.mxu1 %v2770_v4 }
 0x111   : > { %v533_v23 = vpop.permute.xlu0 %532  ;;  %v635_v25 = vpop.permute.xlu1 %634 }
 0x112   : > { %v538_v24 = vsel %vm440_vm1, %v533_v23, 0  ;;  %2194 = vmatmul.mubr.msk.bf16.vlgmr.msra.gmra.mxu0 %vm436_vm2, %v2071_v21  ;;  %2212 = vmatmul.mubr.msk.bf16.vlgmr.msra.gmra.mxu1 %vm436_vm2, %v2076_v22  ;;  %v640_v30 = vsel %vm440_vm1, %v635_v25, 0 }
 0x113   : > { %2204 = vmatpush3.bf16.msra.mxu0 %v538_v24  ;;  %2205 = vmatprep.mubr.msk.bf16.mxu0 %vm2771_vm0, %v2770_v4 }
 0x114   : > { %2215 = vmatprep.subr.bf16.mxu0 %v2770_v4  ;;  %2223 = vmatprep.mubr.msk.bf16.mxu1 %vm2771_vm0, %v2770_v4 }
 0x115   : > { %v686_v26 = vpop.permute.xlu0 %685  ;;  %v737_v33 = vpop.permute.xlu1 %736 }
 0x116   : > { %v691_v27 = vsel %vm440_vm1, %v686_v26, 0  ;;  %v742_v36 = vsel %vm440_vm1, %v737_v33, 0  ;;  %v2122_v33 = vld [vmem:[%s3456_s20 + $0x34] sm:$0x3] }
 0x117   : > { %2222 = vmatpush3.bf16.msra.mxu1 %v691_v27  ;;  %v2114_v27 = vld [vmem:[%s3456_s20 + $0x2c] sm:$0x3] }
 0x118   : > { %2233 = vmatprep.subr.bf16.mxu1 %v2770_v4 }
 0x119   : > { %v788_v31 = vpop.permute.xlu0 %787  ;;  %v839_v38 = vpop.permute.xlu1 %838 }
 0x11a   : > { %2206 = vmatmul.mubr.msk.bf16.vlgmr.msra.gmra.mxu0 %vm436_vm2, %v2074_v28  ;;  %2224 = vmatmul.mubr.msk.bf16.vlgmr.msra.gmra.mxu1 %vm436_vm2, %v2080_v29  ;;  %v793_v32 = vsel %vm440_vm1, %v788_v31, 0  ;;  %v844_v42 = vsel %vm440_vm1, %v839_v38, 0  ;;  %v2120_v28 = vld [vmem:[%s3456_s20 + $0x32] sm:$0x3]  ;;  %v2118_v31 = vld [vmem:[%s3456_s20 + $0x30] sm:$0x3] }
 0x11b   : > { %2216 = vmatpush3.bf16.msra.mxu0 %v640_v30  ;;  %2217 = vmatprep.mubr.msk.bf16.mxu0 %vm2771_vm0, %v2770_v4 }
 0x11c   : > { %2227 = vmatprep.subr.bf16.mxu0 %v2770_v4  ;;  %2234 = vmatpush3.bf16.msra.mxu1 %v793_v32 }
 0x11d   : > { %2235 = vmatprep.mubr.msk.bf16.mxu1 %vm2771_vm0, %v2770_v4  ;;  %2245 = vmatprep.subr.bf16.mxu1 %v2770_v4  ;;  %v998_v39 = vpop.permute.xlu1 %997  ;;  %v947_v44 = vpop.permute.xlu0 %946 }
 0x11e   : > { %v1003_v43 = vsel %vm440_vm1, %v998_v39, 0  ;;  %v952_v48 = vsel %vm440_vm1, %v947_v44, 0 }
 0x121   : > { %v1100_v45 = vpop.permute.xlu1 %1099  ;;  %v1049_v50 = vpop.permute.xlu0 %1048 }
 0x122   : > { %2218 = vmatmul.mubr.msk.bf16.vlgmr.msra.gmra.mxu0 %vm436_vm2, %v2078_v34  ;;  %2236 = vmatmul.mubr.msk.bf16.vlgmr.msra.gmra.mxu1 %vm436_vm2, %v2084_v35  ;;  %v1105_v49 = vsel %vm440_vm1, %v1100_v45, 0  ;;  %v1054_v54 = vsel %vm440_vm1, %v1049_v50, 0 }
 0x123   : > { %2228 = vmatpush3.bf16.msra.mxu0 %v742_v36  ;;  %2229 = vmatprep.mubr.msk.bf16.mxu0 %vm2771_vm0, %v2770_v4 }
 0x124   : > { %2239 = vmatprep.subr.bf16.mxu0 %v2770_v4  ;;  %2246 = vmatpush3.bf16.msra.mxu1 %v893_v37 }
 0x125   : > { %2247 = vmatprep.mubr.msk.bf16.mxu1 %vm2771_vm0, %v2770_v4  ;;  %2257 = vmatprep.subr.bf16.mxu1 %v2770_v4  ;;  %v1202_v51 = vpop.permute.xlu1 %1201  ;;  %v1151_v56 = vpop.permute.xlu0 %1150 }
 0x126   : > { %v1207_v55 = vsel %vm440_vm1, %v1202_v51, 0  ;;  %v1156_v60 = vsel %vm440_vm1, %v1151_v56, 0 }
 0x129   : > { %v1304_v57 = vpop.permute.xlu1 %1303  ;;  %v1253_v62 = vpop.permute.xlu0 %1252 }
 0x12a   : > { %2230 = vmatmul.mubr.msk.bf16.vlgmr.msra.gmra.mxu0 %vm436_vm2, %v2082_v40  ;;  %2248 = vmatmul.mubr.msk.bf16.vlgmr.msra.gmra.mxu1 %vm436_vm2, %v2088_v41  ;;  %v1309_v61 = vsel %vm440_vm1, %v1304_v57, 0  ;;  %v1258_v2 = vsel %vm440_vm1, %v1253_v62, 0 }
 0x12b   : > { %2240 = vmatpush3.bf16.msra.mxu0 %v844_v42  ;;  %2241 = vmatprep.mubr.msk.bf16.mxu0 %vm2771_vm0, %v2770_v4 }
 0x12c   : > { %2251 = vmatprep.subr.bf16.mxu0 %v2770_v4  ;;  %2258 = vmatpush3.bf16.msra.mxu1 %v1003_v43 }
 0x12d   : > { %2259 = vmatprep.mubr.msk.bf16.mxu1 %vm2771_vm0, %v2770_v4  ;;  %2269 = vmatprep.subr.bf16.mxu1 %v2770_v4  ;;  %v1412_v63 = vpop.permute.xlu0 %1411  ;;  %v1463_v10 = vpop.permute.xlu1 %1462 }
 0x12e   : > { %v1417_v3 = vsel %vm440_vm1, %v1412_v63, 0  ;;  %v1468_v14 = vsel %vm440_vm1, %v1463_v10, 0 }
 0x131   : > { %v1514_v5 = vpop.permute.xlu0 %1513  ;;  %v1565_v16 = vpop.permute.xlu1 %1564 }
 0x132   : > { %2242 = vmatmul.mubr.msk.bf16.vlgmr.msra.gmra.mxu0 %vm436_vm2, %v2086_v46  ;;  %2260 = vmatmul.mubr.msk.bf16.vlgmr.msra.gmra.mxu1 %vm436_vm2, %v2092_v47  ;;  %v1519_v9 = vsel %vm440_vm1, %v1514_v5, 0  ;;  %v1570_v22 = vsel %vm440_vm1, %v1565_v16, 0 }
 0x133   : > { %2252 = vmatpush3.bf16.msra.mxu0 %v952_v48  ;;  %2253 = vmatprep.mubr.msk.bf16.mxu0 %vm2771_vm0, %v2770_v4 }
 0x134   : > { %2263 = vmatprep.subr.bf16.mxu0 %v2770_v4  ;;  %2270 = vmatpush3.bf16.msra.mxu1 %v1105_v49 }
 0x135   : > { %2271 = vmatprep.mubr.msk.bf16.mxu1 %vm2771_vm0, %v2770_v4  ;;  %2281 = vmatprep.subr.bf16.mxu1 %v2770_v4  ;;  %v1616_v11 = vpop.permute.xlu0 %1615  ;;  %v1667_v26 = vpop.permute.xlu1 %1666 }
 0x136   : > { %v1621_v15 = vsel %vm440_vm1, %v1616_v11, 0  ;;  %v1672_v29 = vsel %vm440_vm1, %v1667_v26, 0 }
 0x139   : > { %v1718_v18 = vpop.permute.xlu0 %1717  ;;  %v1769_v30 = vpop.permute.xlu1 %1768 }
 0x13a   : > { %2254 = vmatmul.mubr.msk.bf16.vlgmr.msra.gmra.mxu0 %vm436_vm2, %v2090_v52  ;;  %2272 = vmatmul.mubr.msk.bf16.vlgmr.msra.gmra.mxu1 %vm436_vm2, %v2096_v53  ;;  %v1723_v23 = vsel %vm440_vm1, %v1718_v18, 0  ;;  %v1774_v32 = vsel %vm440_vm1, %v1769_v30, 0 }
 0x13b   : > { %2264 = vmatpush3.bf16.msra.mxu0 %v1054_v54  ;;  %2265 = vmatprep.mubr.msk.bf16.mxu0 %vm2771_vm0, %v2770_v4 }
 0x13c   : > { %2275 = vmatprep.subr.bf16.mxu0 %v2770_v4  ;;  %2282 = vmatpush3.bf16.msra.mxu1 %v1207_v55 }
 0x13d   : > { %2283 = vmatprep.mubr.msk.bf16.mxu1 %vm2771_vm0, %v2770_v4  ;;  %2293 = vmatprep.subr.bf16.mxu1 %v2770_v4 }
 0x142   : > { %2266 = vmatmul.mubr.msk.bf16.vlgmr.msra.gmra.mxu0 %vm436_vm2, %v2094_v58  ;;  %2284 = vmatmul.mubr.msk.bf16.vlgmr.msra.gmra.mxu1 %vm436_vm2, %v2100_v59 }
 0x143   : > { %2276 = vmatpush3.bf16.msra.mxu0 %v1156_v60  ;;  %2277 = vmatprep.mubr.msk.bf16.mxu0 %vm2771_vm0, %v2770_v4 }
 0x144   : > { %2287 = vmatprep.subr.bf16.mxu0 %v2770_v4  ;;  %2294 = vmatpush3.bf16.msra.mxu1 %v1309_v61 }
 0x145   : > { %2295 = vmatprep.mubr.msk.bf16.mxu1 %vm2771_vm0, %v2770_v4  ;;  %2305 = vmatprep.subr.bf16.mxu1 %v2770_v4 }
 0x14a   : > { %2278 = vmatmul.mubr.msk.bf16.vlgmr.msra.gmra.mxu0 %vm436_vm2, %v2098_v0  ;;  %2296 = vmatmul.mubr.msk.bf16.vlgmr.msra.gmra.mxu1 %vm436_vm2, %v2104_v1 }
 0x14b   : > { %2288 = vmatpush3.bf16.msra.mxu0 %v1258_v2  ;;  %2289 = vmatprep.mubr.msk.bf16.mxu0 %vm2771_vm0, %v2770_v4 }
 0x14c   : > { %2299 = vmatprep.subr.bf16.mxu0 %v2770_v4  ;;  %2306 = vmatpush3.bf16.msra.mxu1 %v1417_v3 }
 0x14d   : > { %2307 = vmatprep.mubr.msk.bf16.mxu1 %vm2771_vm0, %v2770_v4  ;;  %2317 = vmatprep.subr.bf16.mxu1 %v2770_v4 }
 0x152   : > { %2290 = vmatmul.mubr.msk.bf16.vlgmr.msra.gmra.mxu0 %vm436_vm2, %v2102_v6  ;;  %2308 = vmatmul.mubr.msk.bf16.vlgmr.msra.gmra.mxu1 %vm436_vm2, %v2108_v7 }
 0x153   : > { %2300 = vmatpush3.bf16.msra.mxu0 %v1358_v8  ;;  %2301 = vmatprep.mubr.msk.bf16.mxu0 %vm2771_vm0, %v2770_v4 }
 0x154   : > { %2311 = vmatprep.subr.bf16.mxu0 %v2770_v4  ;;  %2318 = vmatpush3.bf16.msra.mxu1 %v1519_v9 }
 0x155   : > { %2319 = vmatprep.mubr.msk.bf16.mxu1 %vm2771_vm0, %v2770_v4  ;;  %2329 = vmatprep.subr.bf16.mxu1 %v2770_v4 }
 0x15a   : > { %2302 = vmatmul.mubr.msk.bf16.vlgmr.msra.gmra.mxu0 %vm436_vm2, %v2106_v12  ;;  %2320 = vmatmul.mubr.msk.bf16.vlgmr.msra.gmra.mxu1 %vm436_vm2, %v2112_v13 }
 0x15b   : > { %2312 = vmatpush3.bf16.msra.mxu0 %v1468_v14  ;;  %2313 = vmatprep.mubr.msk.bf16.mxu0 %vm2771_vm0, %v2770_v4 }
 0x15c   : > { %2323 = vmatprep.subr.bf16.mxu0 %v2770_v4  ;;  %2330 = vmatpush3.bf16.msra.mxu1 %v1621_v15 }
 0x15d   : > { %2331 = vmatprep.mubr.msk.bf16.mxu1 %vm2771_vm0, %v2770_v4  ;;  %2341 = vmatprep.subr.bf16.mxu1 %v2770_v4  ;;  %v3265_v17 = vpop.f32.mrf.mxu1 }
 0x15f   : > { %v2201_v21 = vpop.f32.mrf.mxu1 }
 0x161   : > { %v527_v24 = vpop.f32.mrf.mxu1 }
 0x162   : > { %2314 = vmatmul.mubr.msk.bf16.vlgmr.msra.gmra.mxu0 %vm436_vm2, %v2110_v19  ;;  %2332 = vmatmul.mubr.msk.bf16.vlgmr.msra.gmra.mxu1 %vm436_vm2, %v2116_v20 }
 0x163   : > { %2324 = vmatpush3.bf16.msra.mxu0 %v1570_v22  ;;  %2325 = vmatprep.mubr.msk.bf16.mxu0 %vm2771_vm0, %v2770_v4  ;;  %v2202_v25 = vpop.f32.mrf.mxu1 }
 0x164   : > { %2335 = vmatprep.subr.bf16.mxu0 %v2770_v4  ;;  %2342 = vmatpush3.bf16.msra.mxu1 %v1723_v23 }
 0x165   : > { %2343 = vmatprep.mubr.msk.bf16.mxu1 %vm2771_vm0, %v2770_v4 }
 0x16a   : > { %2326 = vmatmul.mubr.msk.bf16.vlgmr.msra.gmra.mxu0 %vm436_vm2, %v2114_v27  ;;  %2344 = vmatmul.mubr.msk.bf16.vlgmr.msra.gmra.mxu1 %vm436_vm2, %v2120_v28 }
 0x16b   : > { %2336 = vmatpush3.bf16.msra.mxu0 %v1672_v29  ;;  %2337 = vmatprep.mubr.msk.bf16.mxu0 %vm2771_vm0, %v2770_v4 }
 0x16c   : > { %2347 = vmatprep.subr.bf16.mxu0 %v2770_v4 }
 0x172   : > { %2338 = vmatmul.mubr.msk.bf16.vlgmr.msra.gmra.mxu0 %vm436_vm2, %v2118_v31 }
 0x173   : > { %2348 = vmatpush3.bf16.msra.mxu0 %v1774_v32  ;;  %2349 = vmatprep.mubr.msk.bf16.mxu0 %vm2771_vm0, %v2770_v4 }
 0x17a   : > { %2350 = vmatmul.mubr.msk.bf16.vlgmr.msra.gmra.mxu0 %vm436_vm2, %v2122_v33 }
 0x1d2   : > { %v478_v34 = vpop.f32.mrf.mxu0  ;;  %v625_v35 = vpop.f32.mrf.mxu1 }
 0x1d3   : > { %v525_v1 = vadd.f32 %v3265_v17, %v478_v34 }
 0x1d4   : > { %v2195_v36 = vpop.f32.mrf.mxu0  ;;  %v2213_v37 = vpop.f32.mrf.mxu1 }
 0x1d6   : > { %v481_v38 = vpop.f32.mrf.mxu0  ;;  %v628_v39 = vpop.f32.mrf.mxu1 }
 0x1d8   : > { %v2196_v40 = vpop.f32.mrf.mxu0  ;;  %v2214_v41 = vpop.f32.mrf.mxu1 }
 0x1da   : > { %v574_v42 = vpop.f32.mrf.mxu0  ;;  %v727_v43 = vpop.f32.mrf.mxu1 }
 0x1db   : > { %v580_v5 = vadd.f32 %v574_v42, %v525_v1 }
 0x1dc   : > { %v2207_v44 = vpop.f32.mrf.mxu0  ;;  %v2225_v45 = vpop.f32.mrf.mxu1 }
 0x1dd   : > { %v631_v10 = vadd.f32 %v625_v35, %v580_v5 }
 0x1de   : > { %v577_v46 = vpop.f32.mrf.mxu0  ;;  %v730_v4 = vpop.f32.mrf.mxu1 }
 0x1e0   : > { %v2208_v47 = vpop.f32.mrf.mxu0  ;;  %v2226_v48 = vpop.f32.mrf.mxu1 }
 0x1e2   : > { %v676_v49 = vpop.f32.mrf.mxu0  ;;  %v829_v50 = vpop.f32.mrf.mxu1 }
 0x1e3   : > { %v682_v13 = vadd.f32 %v676_v49, %v631_v10 }
 0x1e4   : > { %v2219_v51 = vpop.f32.mrf.mxu0  ;;  %v2237_v52 = vpop.f32.mrf.mxu1 }
 0x1e5   : > { %v733_v19 = vadd.f32 %v727_v43, %v682_v13 }
 0x1e6   : > { %v679_v53 = vpop.f32.mrf.mxu0  ;;  %v832_v54 = vpop.f32.mrf.mxu1 }
 0x1e8   : > { %v2220_v55 = vpop.f32.mrf.mxu0  ;;  %v2238_v56 = vpop.f32.mrf.mxu1 }
 0x1ea   : > { %v778_v57 = vpop.f32.mrf.mxu0  ;;  %v929_v58 = vpop.f32.mrf.mxu1 }
 0x1eb   : > { %v784_v22 = vadd.f32 %v778_v57, %v733_v19 }
 0x1ec   : > { %v2231_v59 = vpop.f32.mrf.mxu0  ;;  %v2249_v60 = vpop.f32.mrf.mxu1 }
 0x1ed   : > { %v835_v26 = vadd.f32 %v829_v50, %v784_v22 }
 0x1ee   : > { %v781_v61 = vpop.f32.mrf.mxu0  ;;  %v932_v62 = vpop.f32.mrf.mxu1 }
 0x1f0   : > { %v2232_v63 = vpop.f32.mrf.mxu0  ;;  %v2250_v0 = vpop.f32.mrf.mxu1 }
 0x1f2   : > { %v880_v2 = vpop.f32.mrf.mxu0  ;;  %v1039_v3 = vpop.f32.mrf.mxu1 }
 0x1f3   : > { %v886_v29 = vadd.f32 %v880_v2, %v835_v26 }
 0x1f4   : > { %v2243_v6 = vpop.f32.mrf.mxu0  ;;  %v2261_v7 = vpop.f32.mrf.mxu1 }
 0x1f5   : > { %v935_v34 = vadd.f32 %v929_v58, %v886_v29 }
 0x1f6   : > { %v883_v8 = vpop.f32.mrf.mxu0  ;;  %v1042_v9 = vpop.f32.mrf.mxu1 }
 0x1f8   : > { %v2244_v11 = vpop.f32.mrf.mxu0  ;;  %v2262_v12 = vpop.f32.mrf.mxu1 }
 0x1fa   : > { %v988_v14 = vpop.f32.mrf.mxu0  ;;  %v1141_v15 = vpop.f32.mrf.mxu1 }
 0x1fb   : > { %v994_v37 = vadd.f32 %v988_v14, %v935_v34 }
 0x1fc   : > { %v2255_v16 = vpop.f32.mrf.mxu0  ;;  %v2273_v18 = vpop.f32.mrf.mxu1 }
 0x1fd   : > { %v1045_v42 = vadd.f32 %v1039_v3, %v994_v37  ;;  %v1829_v37 = vstv %s2124_s19  ;;  %s2134_s19 = sshll.u32 %s1898_s17, 5 }
 0x1fe   : > { %v991_v20 = vpop.f32.mrf.mxu0  ;;  %v1144_v21 = vpop.f32.mrf.mxu1 }
 0x200   : > { %v2256_v17 = vpop.f32.mrf.mxu0  ;;  %v2274_v23 = vpop.f32.mrf.mxu1 }
 0x202   : > { %v1090_v24 = vpop.f32.mrf.mxu0  ;;  %v1243_v25 = vpop.f32.mrf.mxu1 }
 0x203   : > { %v1096_v45 = vadd.f32 %v1090_v24, %v1045_v42 }
 0x204   : > { %v2267_v27 = vpop.f32.mrf.mxu0  ;;  %v2285_v28 = vpop.f32.mrf.mxu1 }
 0x205   : > { %v1147_v49 = vadd.f32 %v1141_v15, %v1096_v45 }
 0x206   : > { %v1093_v30 = vpop.f32.mrf.mxu0  ;;  %v1246_v31 = vpop.f32.mrf.mxu1 }
 0x208   : > { %v2268_v32 = vpop.f32.mrf.mxu0  ;;  %v2286_v33 = vpop.f32.mrf.mxu1 }
 0x209   : > { %v1821_v32 = vpop.permute.xlu0 %1820 }
 0x20a   : > { %v1192_v35 = vpop.f32.mrf.mxu0  ;;  %v1345_v36 = vpop.f32.mrf.mxu1 }
 0x20b   : > { %v1198_v52 = vadd.f32 %v1192_v35, %v1147_v49 }
 0x20c   : > { %v2279_v38 = vpop.f32.mrf.mxu0  ;;  %v2297_v39 = vpop.f32.mrf.mxu1 }
 0x20d   : > { %v1249_v57 = vadd.f32 %v1243_v25, %v1198_v52  ;;  %v1836_v38 = vstv %s2125_s5  ;;  %s408_s5 = scalar_lea.vmem [#allocation11], %s2069_s0 }
 0x20e   : > { %v1195_v40 = vpop.f32.mrf.mxu0  ;;  %v1348_v41 = vpop.f32.mrf.mxu1 }
 0x20f   : > { %v1856_v40 = vstv %s2128_s23  ;;  %v1863_v41 = vstv %s2129_s22  ;;  %s3460_s22 = sld [smem:[#allocation31_spill]] }
 0x210   : > { %v2280_v43 = vpop.f32.mrf.mxu0  ;;  %v2298_v44 = vpop.f32.mrf.mxu1 }
 0x211   : > { %v1826_v43 = vstv %s3306_s18  ;;  %v1843_v44 = vstv %s3308_s6  ;;  %s3459_s18 = sld [smem:[#allocation21_spill]]  ;;  %s1902_s6 = sshll.u32 %s408_s5, 4  ;;  %s1903_s6 = int_to_ptr.vmem [resolvable:$true] %s1902_s6 }
 0x212   : > { %v1294_v46 = vpop.f32.mrf.mxu0  ;;  %v1453_v4 = vpop.f32.mrf.mxu1 }
 0x213   : > { %v1300_v60 = vadd.f32 %v1294_v46, %v1249_v57 }
 0x214   : > { %v2291_v47 = vpop.f32.mrf.mxu0  ;;  %v2309_v48 = vpop.f32.mrf.mxu1 }
 0x215   : > { %v1351_v1 = vadd.f32 %v1345_v36, %v1300_v60  ;;  %v1870_v47 = vstv %s2130_s24  ;;  %s2607_s24 = scalar_lea.vmem %s1903_s6, 32 }
 0x216   : > { %v1297_v50 = vpop.f32.mrf.mxu0  ;;  %v1456_v51 = vpop.f32.mrf.mxu1  ;;  %p2608_p6 = scmp.ne.s32.totalorder %s1903_s6, %s2607_s24 }
 0x217   : > { %p3461_p5 = scmp.ne.s32.totalorder %s3459_s18, 0 }
 0x218   : > { %v2292_v53 = vpop.f32.mrf.mxu0  ;;  %v2310_v54 = vpop.f32.mrf.mxu1 }
 0x219   : > { %p2609_p12 = pnand %p2608_p6, %p3461_p5 }
 0x21a   : > { %v1394_v55 = vpop.f32.mrf.mxu0  ;;  %v1555_v56 = vpop.f32.mrf.mxu1 }
 0x21b   : > { %v1400_v5 = vadd.f32 %v1394_v55, %v1351_v1  ;;  %p2610_p9 = pneg %p2609_p12 }
 0x21c   : > { %v2303_v58 = vpop.f32.mrf.mxu0  ;;  %v2321_v59 = vpop.f32.mrf.mxu1 }
 0x21d   : > { %v1459_v10 = vadd.f32 %v1453_v4, %v1400_v5  ;;  %v1853_v4 = vstv %s2127_s16  ;;  %s3320_s16 = scalar_lea.hbm %s3460_s22, %s2134_s19 }
 0x21e   : > { %v1397_v61 = vpop.f32.mrf.mxu0  ;;  %v1558_v62 = vpop.f32.mrf.mxu1 }
 0x220   : > { %v2304_v63 = vpop.f32.mrf.mxu0  ;;  %v2322_v0 = vpop.f32.mrf.mxu1 }
 0x221   : > { %v1877_v0 = vstv %s2131_s4  ;;  %s2781_s4 = smov [#allocation11]  }
 0x222   : > { %v1504_v2 = vpop.f32.mrf.mxu0  ;;  %v1657_v3 = vpop.f32.mrf.mxu1 }
 0x223   : > { %v1510_v13 = vadd.f32 %v1504_v2, %v1459_v10 }
 0x224   : > { %v2315_v6 = vpop.f32.mrf.mxu0  ;;  %v2333_v7 = vpop.f32.mrf.mxu1 }
 0x225   : > { %v1561_v19 = vadd.f32 %v1555_v56, %v1510_v13 }
 0x226   : > { %v1507_v8 = vpop.f32.mrf.mxu0  ;;  %v1660_v9 = vpop.f32.mrf.mxu1 }
 0x228   : > { %v2316_v11 = vpop.f32.mrf.mxu0  ;;  %v2334_v12 = vpop.f32.mrf.mxu1 }
 0x22a   : > { %v1606_v14 = vpop.f32.mrf.mxu0  ;;  %v1759_v15 = vpop.f32.mrf.mxu1 }
 0x22b   : > { %v1612_v22 = vadd.f32 %v1606_v14, %v1561_v19 }
 0x22c   : > { %v2327_v16 = vpop.f32.mrf.mxu0  ;;  %v2345_v18 = vpop.f32.mrf.mxu1 }
 0x22d   : > { %v1663_v25 = vadd.f32 %v1657_v3, %v1612_v22  ;;  %v1850_v3 = vstv %s1849_s11  ;;  %s2611_s11 = sshll.u32 %s2781_s4, 4  ;;  %s2612_s11 = int_to_ptr.vmem [resolvable:$false] %s2611_s11 }
 0x22e   : > { %v1609_v20 = vpop.f32.mrf.mxu0  ;;  %v1762_v21 = vpop.f32.mrf.mxu1  ;;  %s2613_s0 = scalar_lea.vmem %s2612_s11, 64  ;;  %p2614_p2 = scmp.lt.s32.totalorder %s1903_s6, %s2612_s11 }
 0x22f   : > { %p2615_p13 = scmp.lt.s32.totalorder %s2613_s0, %s2607_s24 }
 0x230   : > { %v2328_v17 = vpop.f32.mrf.mxu0  ;;  %v2346_v23 = vpop.f32.mrf.mxu1 }
 0x231   : > { %p2616_p4 = por %p2615_p13, %p2614_p2 }
 0x232   : > { %v1708_v24 = vpop.f32.mrf.mxu0 }
 0x233   : > { %v1714_v27 = vadd.f32 %v1708_v24, %v1663_v25  ;;  %p2617_p7 = pnand %p2616_p4, %p2610_p9 }
 0x234   : > { %v2339_v26 = vpop.f32.mrf.mxu0 }
 0x235   : > { %v1765_v30 = vadd.f32 %v1759_v15, %v1714_v27 }
 0x236   : > { %v1711_v28 = vpop.f32.mrf.mxu0 }
 0x238   : > { %v2340_v29 = vpop.f32.mrf.mxu0 }
 0x23a   : > { %v1810_v31 = vpop.f32.mrf.mxu0 }
 0x23b   : > { %v1816_v33 = vadd.f32 %v1810_v31, %v1765_v30 }
 0x23c   : > { %v2351_v34 = vpop.f32.mrf.mxu0 }
 0x23d   : > { %v1823_v35 = vadd.f32 %v1821_v32, %v1816_v33 }
 0x23e   : > { %v1813_v36 = vpop.f32.mrf.mxu0 }
 0x23f   : > { %v1824_v39 = vmax.f32 %v1823_v35, 0.0 }
 0x240   : > { %v2352_v42 = vpop.f32.mrf.mxu0 }
 0x241   : > { %v1830_v45 = vmul.f32 %v1829_v37, %v1824_v39  ;;  %v1837_v46 = vmul.f32 %v1836_v38, %v1824_v39  ;;  %v1857_v48 = vmul.f32 %v1856_v40, %v1824_v39  ;;  %v1864_v49 = vmul.f32 %v1863_v41, %v1824_v39 }
 0x242   : > { %v1827_v50 = vmul.f32 %v1826_v43, %v1824_v39  ;;  %v1844_v52 = vmul.f32 %v1843_v44, %v1824_v39  ;;  %v1854_v53 = vmul.f32 %v1853_v4, %v1824_v39  ;;  %v1871_v55 = vmul.f32 %v1870_v47, %v1824_v39 }
 0x243   : > { %v1832_v51 = vrot.slane %v1830_v45, 1  ;;  %v1859_v54 = vrot.slane %v1857_v48, 1  ;;  %v1839_v57 = vrot.slane %v1837_v46, 2  ;;  %v1866_v59 = vrot.slane %v1864_v49, 2 }
 0x244   : > { %v1846_v61 = vrot.slane %v1844_v52, 3  ;;  %v1873_v63 = vrot.slane %v1871_v55, 3 }
 0x245   : > { %v1834_v56 = vadd.f32 %v1832_v51, %v1827_v50  ;;  %v1861_v58 = vadd.f32 %v1859_v54, %v1854_v53 }
 0x247   : > { %v1841_v60 = vadd.f32 %v1839_v57, %v1834_v56  ;;  %v1868_v62 = vadd.f32 %v1866_v59, %v1861_v58 }
 0x249   : > { %v1848_v1 = vadd.f32 %v1846_v61, %v1841_v60  ;;  %v1875_v2 = vadd.f32 %v1873_v63, %v1868_v62 }
 0x24b   : > { %v1878_v5 = vadd.f32 %v1877_v0, %v1875_v2  ;;  %v1851_v6 = vadd.f32 %v1850_v3, %v1848_v1 }
 0x24d   : > { %v1880_v7 = vrot.slane %v1878_v5, 7 }
 0x24f   : > { %v1883_v8 = vsel %vm1882_vm3, %v1851_v6, %v1880_v7 }
 0x250   : > { %1885 = vst.msk [vmem:[%s408_s5] sm:$0x3] %vm1884_vm4, %v1883_v8 }
 0x251   : > { %2620 = shalt.err (!%p2617_p7)
}
 0x252   : > { %s2621_s21 = scalar_lea.hbm %s3320_s16, 32  ;;  %s2625_s17 = scalar_lea.hbm %s3460_s22, 512 }
 0x253   : > { %p2622_p11 = scmp.ne.s32.totalorder %s3320_s16, %s2621_s21  ;;  %p2626_p1 = scmp.lt.s32.totalorder %s3320_s16, %s3460_s22 }
 0x254   : > { %p2627_p3 = scmp.lt.s32.totalorder %s2625_s17, %s2621_s21 }
 0x255   : > { %p2623_p10 = pnand %p2622_p11, %p3461_p5 }
 0x256   : > { %p2628_p0 = por %p2627_p3, %p2626_p1 }
 0x257   : > { %p2624_p8 = pneg %p2623_p10 }
 0x259   : > { %p2629_p6 = pnand %p2628_p0, %p2624_p8 }
 0x25b   : > { %2632 = shalt.err (!%p2629_p6)
}
 0x25c   : > { %2366 = dma.vmem_to_hbm [thread:$0]  (%p3461_p5), %s1903_s6, 32, %s3320_s16, %s1887_s10  }
 0x25d PF: > { %s3462_s25 = sld [smem:[#allocation17_spill]]  ;;  %p2391_p12 = scmp.ge.s32.totalorder %s2763_s14, 2 }
 0x25e   : > { %s3463_s23 = sld [smem:[#allocation22_spill]] }
 0x263   : > { %s1914_s24 = sand.u32 1, %s3462_s25  }
 0x264   : > { %p3464_p9 = scmp.ne.s32.totalorder %s3463_s23, 0  ;;  %s1915_s4 = scalar_lea.sflag [#allocation4], %s1914_s24 }
 0x266   : > { %p2383_p2 = pnand %p2391_p12, %p3464_p9 }
 0x268   : > { %p2384_p13 = pneg %p2383_p2 }
 0x26a   : > { %2706 = dma.done.wait (%p2384_p13), %s1915_s4, 32  }
 0x26b   : > { %2708 = vsyncadd (%p2384_p13), %s1915_s4, 4294967264  ;;  %s28_s14 = sadd.s32 1, %s2763_s14   ;;  %s3466_s24 = sld [smem:[#allocation18_spill]] }
 0x26c   : > { %p3345_p4 = scmp.ge.s32.totalorder %s28_s14, 18   ;;  %s3467_s18 = sld [smem:[#allocation23_spill]] }
 0x26d   : > { %s3468_s6 = sld [smem:[#allocation24_spill]]  ;;  %s3470_s25 = smov %s2719_s26 }
 0x26e   : > { %s3471_s26 = smov %s2980_s15  ;;  %s3472_s27 = smov %s2727_s28 }
 0x26f   : > { %s3473_s28 = smov %s2731_s29  ;;  %s3474_s29 = smov %s3005_s7 }
 0x270   : > { %s3475_s30 = smov %s2739_s8  ;;  %s3476_s8 = smov %s2743_s9 }
 0x271   : > { %s3477_s9 = smov %s2973_s3  ;;  %s3478_s10 = smov %s2755_s12 }
 0x272   : > { %s3479_s11 = smov %s2759_s13  ;;  %s3480_s12 = smov %s3467_s18 }
 0x273   : > { %s3481_s13 = smov %s3468_s6  ;;  %27 = sbr.rel (!%p3345_p4) target bundleno = 21 (0x15), region = 144 }
 0x278   :  { %1920 = vsyncpa [#allocation3], 1 }
 0x279   :  { %1922 = vsyncpa [#allocation3 + $0x1], 1 }
 0x27a   :  { %1923 = vsyncpa [#allocation7], 1 }
 0x27b   :  { %1925 = vsyncpa [#allocation7 + $0x1], 1 }
 0x27c   :  { %1926 = vsyncpa [#allocation4], 1 }
 0x27d   :  { %1928 = vsyncpa [#allocation4 + $0x1], 1 }
 0x27e   :  { %1929 = vsyncpa [#allocation5], 1 }
 0x27f   :  { %1931 = vsyncpa [#allocation5 + $0x1], 1 }
 0x280   :  { %1932 = vsyncpa [#allocation10], 1 }

</bundles_post_ra>
